<compile_context>
chip_gen: v7x
topology: tpu7x:2x2x1
jax: 0.10.0
libtpu: 0.0.40
codegen_flags: <defaults>
</compile_context>

<pallas_src>
import functools

import jax
import jax.numpy as jnp
from jax.experimental import pallas as pl
from jax.experimental.pallas import tpu as pltpu

F32 = jnp.float32
BF16 = jnp.bfloat16


# ------------------------------ fused kernel ------------------------------- #

def make_fused_kernel(num_layers, num_heads, head_dim, eps=1e-5):
    H = num_heads * head_dim
    scale = 1.0 / float(head_dim) ** 0.5

    def layer_norm(y, w, b):
        mu = jnp.mean(y, axis=-1, keepdims=True)
        var = jnp.mean((y - mu) ** 2, axis=-1, keepdims=True)
        return (y - mu) * jax.lax.rsqrt(var + eps) * w + b

    def kernel(tok_ref, add_ref, wemb_ref,
               wqkv_ref, bqkv_ref, wo_ref, bo_ref,
               ln1w_ref, ln1b_ref, w1_ref, b1_ref, w2_ref, b2_ref,
               ln2w_ref, ln2b_ref, fcw_ref, fcb_ref,
               o_ref, attn_scratch):
        # ---- fused [q|p|z] token embedding (single matmul) + folded
        #      (embedding-bias + positional + noise-scale) additive term ----
        x = jnp.dot(tok_ref[...].astype(BF16), wemb_ref[...],
                    preferred_element_type=F32) + add_ref[...]          # (T, H)

        # ---- post-LN transformer encoder layers ----
        for l in range(num_layers):
            xb = x.astype(BF16)

            # fused Q/K/V projection: one (T,H)@(H,3H) lane-dense matmul
            qkv = jnp.dot(xb, wqkv_ref[l],
                          preferred_element_type=F32) + bqkv_ref[l]     # (T, 3H)

            # per-head attention on static lane slices of qkv; results are
            # assembled in a (T,H) scratch at static lane offsets.
            for h in range(num_heads):
                lo = h * head_dim
                qh = qkv[:, lo:lo + head_dim].astype(BF16)              # (T, d)
                kh = qkv[:, H + lo:H + lo + head_dim].astype(BF16)      # (T, d)
                vh = qkv[:, 2 * H + lo:2 * H + lo + head_dim].astype(BF16)

                s = jax.lax.dot_general(
                    qh, kh, (((1,), (1,)), ((), ())),
                    preferred_element_type=F32) * scale                 # (T, T)
                s = s - jnp.max(s, axis=-1, keepdims=True)
                pr = jnp.exp(s)
                pr = pr * pl.reciprocal(jnp.sum(pr, axis=-1, keepdims=True),
                                        approx=True)
                hv = jnp.dot(pr.astype(BF16), vh,
                             preferred_element_type=F32)                # (T, d)
                attn_scratch[:, lo:lo + head_dim] = hv

            # single (T,H)@(H,H) output projection
            attn = jnp.dot(attn_scratch[...].astype(BF16), wo_ref[l],
                           preferred_element_type=F32) + bo_ref[l]      # (T, H)

            y = layer_norm(x + attn, ln1w_ref[l], ln1b_ref[l])

            h1 = jnp.maximum(jnp.dot(y.astype(BF16), w1_ref[l],
                                     preferred_element_type=F32) + b1_ref[l],
                             0.0)                                        # (T, 4H)
            ff = jnp.dot(h1.astype(BF16), w2_ref[l],
                         preferred_element_type=F32) + b2_ref[l]         # (T, H)

            x = layer_norm(y + ff, ln2w_ref[l], ln2b_ref[l])

        # ---- output head, token 0 only ----
        out0 = jnp.dot(x[0:1, :].astype(BF16), fcw_ref[...],
                       preferred_element_type=F32) + fcb_ref[...]
        o_ref[...] = out0.astype(o_ref.dtype)

    return kernel


# -------------------------- parameter preparation -------------------------- #

def init_params(key, q_dim, z_dim, block_size, hidden_dim, num_heads,
                num_layers, output_dim, num_noise_scales):
    """PyTorch-layout parameters (nn.Linear weights are (out, in))."""
    num_tokens = 2 * block_size + 1
    keys = iter(jax.random.split(key, 64))

    def lin(kin, kout):
        w = jax.random.normal(next(keys), (kout, kin), F32) * 0.02
        b = jnp.zeros((kout,), F32)
        return w, b

    params = {}
    params["q_emb_w"], params["q_emb_b"] = lin(q_dim, hidden_dim)
    params["p_emb_w"], params["p_emb_b"] = lin(q_dim, hidden_dim)
    params["z_emb_w"], params["z_emb_b"] = lin(z_dim, hidden_dim)
    params["pos_emb"] = jnp.zeros((num_tokens, hidden_dim), F32)
    params["noise_emb"] = jax.random.normal(
        next(keys), (num_noise_scales + 1, hidden_dim), F32) * 0.02

    layers = []
    for _ in range(num_layers):
        lp = {}
        lp["in_proj_w"], lp["in_proj_b"] = lin(hidden_dim, 3 * hidden_dim)
        lp["out_proj_w"], lp["out_proj_b"] = lin(hidden_dim, hidden_dim)
        lp["w1"], lp["b1"] = lin(hidden_dim, 4 * hidden_dim)
        lp["w2"], lp["b2"] = lin(4 * hidden_dim, hidden_dim)
        lp["ln1_w"] = jnp.ones((hidden_dim,), F32)
        lp["ln1_b"] = jnp.zeros((hidden_dim,), F32)
        lp["ln2_w"] = jnp.ones((hidden_dim,), F32)
        lp["ln2_b"] = jnp.zeros((hidden_dim,), F32)
        layers.append(lp)
    params["layers"] = layers

    params["fc_out_w"], params["fc_out_b"] = lin(hidden_dim, output_dim)
    return params


def prepare_kernel_params(params, block_size):
    """Host-side, one-time: transpose to (in,out), pack q/p/z embedding into
    one block-diagonal weight, fold per-token embedding bias + positional
    embedding, stack layers, cast matmul weights to bf16."""
    def row(v):
        return jnp.asarray(v, F32).reshape(1, -1)

    # fused [q | p | z] embedding weight, (2*q_dim + z_dim, H), (in,out) layout
    wemb = jnp.concatenate([jnp.asarray(params["q_emb_w"]).T,
                            jnp.asarray(params["p_emb_w"]).T,
                            jnp.asarray(params["z_emb_w"]).T],
                           axis=0).astype(BF16)

    # per-token embedding bias (+ positional embedding), (T, H) f32
    tok_bias = jnp.concatenate(
        [row(params["z_emb_b"]),
         jnp.tile(row(params["q_emb_b"]), (block_size, 1)),
         jnp.tile(row(params["p_emb_b"]), (block_size, 1))], axis=0)
    tok_bias = tok_bias + jnp.asarray(params["pos_emb"], F32)

    kp = {
        "wemb": wemb,
        "tok_bias": tok_bias,
        "noise": jnp.asarray(params["noise_emb"], F32),
        "fcw": jnp.asarray(params["fc_out_w"]).T.astype(BF16),
        "fcb": row(params["fc_out_b"]),
    }

    wqkv, bqkv, wo, bo = [], [], [], []
    ln1w, ln1b, w1, b1, w2, b2, ln2w, ln2b = [], [], [], [], [], [], [], []
    for lp in params["layers"]:
        wqkv.append(jnp.asarray(lp["in_proj_w"]).T)       # (H, 3H)
        bqkv.append(row(lp["in_proj_b"]))                 # (1, 3H)
        wo.append(jnp.asarray(lp["out_proj_w"]).T)        # (H, H)
        bo.append(row(lp["out_proj_b"]))
        ln1w.append(row(lp["ln1_w"])); ln1b.append(row(lp["ln1_b"]))
        w1.append(jnp.asarray(lp["w1"]).T); b1.append(row(lp["b1"]))
        w2.append(jnp.asarray(lp["w2"]).T); b2.append(row(lp["b2"]))
        ln2w.append(row(lp["ln2_w"])); ln2b.append(row(lp["ln2_b"]))

    kp["wqkv"] = jnp.stack(wqkv).astype(BF16)   # (L, H, 3H)
    kp["bqkv"] = jnp.stack(bqkv)                # (L, 1, 3H)
    kp["wo"] = jnp.stack(wo).astype(BF16)       # (L, H, H)
    kp["bo"] = jnp.stack(bo)                    # (L, 1, H)
    kp["ln1w"] = jnp.stack(ln1w); kp["ln1b"] = jnp.stack(ln1b)
    kp["w1"] = jnp.stack(w1).astype(BF16); kp["b1"] = jnp.stack(b1)
    kp["w2"] = jnp.stack(w2).astype(BF16); kp["b2"] = jnp.stack(b2)
    kp["ln2w"] = jnp.stack(ln2w); kp["ln2b"] = jnp.stack(ln2b)
    return kp


# --------------------------------- forward --------------------------------- #

def simple_transformer_forward(kparams, q, p, q_mask, p_mask, z, *,
                               num_layers, num_heads, num_noise_scales,
                               block_size):
    H = kparams["tok_bias"].shape[1]
    O = kparams["fcb"].shape[1]
    head_dim = H // num_heads
    q_dim = q.shape[1]
    z_dim = z.shape[-1]
    B = block_size
    T = 2 * B + 1

    # ---- tiny wrapper-side prep (a handful of fused XLA ops on KB of data) --
    # block-structured token input: one in-kernel embedding matmul
    row_z = jnp.concatenate([jnp.zeros((1, 2 * q_dim), F32),
                             z.reshape(1, z_dim).astype(F32)], axis=1)
    rows_q = jnp.concatenate([q.astype(F32),
                              jnp.zeros((B, q_dim + z_dim), F32)], axis=1)
    rows_p = jnp.concatenate([jnp.zeros((B, q_dim), F32), p.astype(F32),
                              jnp.zeros((B, z_dim), F32)], axis=1)
    tok = jnp.concatenate([row_z, rows_q, rows_p], axis=0)       # (T, 2qd+zd)

    # noise-scale embedding gather (T=17 rows) folded with bias + positional
    mask = jnp.concatenate([jnp.ones((1,), F32),
                            q_mask[:, 0].astype(F32),
                            p_mask[:, 0].astype(F32)], axis=0)
    idx = (mask * num_noise_scales).astype(jnp.int32)
    addend = kparams["tok_bias"] + jnp.take(kparams["noise"], idx, axis=0)

    args = (tok, addend, kparams["wemb"],
            kparams["wqkv"], kparams["bqkv"], kparams["wo"], kparams["bo"],
            kparams["ln1w"], kparams["ln1b"], kparams["w1"], kparams["b1"],
            kparams["w2"], kparams["b2"], kparams["ln2w"], kparams["ln2b"],
            kparams["fcw"], kparams["fcb"])

    kernel = make_fused_kernel(num_layers, num_heads, head_dim)

    def full(shape):
        zero = (0,) * len(shape)
        return pl.BlockSpec(shape, lambda i, _z=zero: _z)

    out = pl.pallas_call(
        kernel,
        out_shape=jax.ShapeDtypeStruct((1, O), F32),
        grid=(1,),
        in_specs=[full(a.shape) for a in args],
        out_specs=full((1, O)),
        scratch_shapes=[pltpu.VMEM((T, H), F32)],    # per-layer attn assembly
        compiler_params=pltpu.CompilerParams(
            dimension_semantics=("arbitrary",)),
    )(*args)
    return out[0]


# ----------------------------------- main ----------------------------------- #

if __name__ == "__main__":
    q_dim = 8
    z_dim = 8
    block_size = 8
    hidden_dim = 32
    num_heads = 4
    num_layers = 2
    output_dim = 16
    num_noise_scales = 10

    key = jax.random.PRNGKey(0)
    kp_, kq, kpp, kz, kmq, kmp = jax.random.split(key, 6)

    params = init_params(kp_, q_dim, z_dim, block_size, hidden_dim, num_heads,
                         num_layers, output_dim, num_noise_scales)
    kparams = prepare_kernel_params(params, block_size)

    q = jax.random.normal(kq, (block_size, q_dim), F32)
    p = jax.random.normal(kpp, (block_size, q_dim), F32)
    z = jax.random.normal(kz, (z_dim,), F32)
    q_mask = jax.random.bernoulli(kmq, 0.5, (block_size, 1)).astype(F32)
    p_mask = jax.random.bernoulli(kmp, 0.5, (block_size, 1)).astype(F32)

    fwd = jax.jit(functools.partial(simple_transformer_forward,
                                    num_layers=num_layers,
                                    num_heads=num_heads,
                                    num_noise_scales=num_noise_scales,
                                    block_size=block_size))
    out = fwd(kparams, q, p, q_mask, p_mask, z)
    out = jax.block_until_ready(out)
    assert out.shape == (output_dim,)
    print("KERNEL_OK")
</pallas_src>

<mosaic_0001>
module attributes {stable_mosaic.version = 11 : i64} {
  func.func @kernel(%arg0: i32, %arg1: memref<17x24xf32, #tpu.memory_space<vmem>>, %arg2: memref<17x32xf32, #tpu.memory_space<vmem>>, %arg3: memref<24x32xbf16, #tpu.memory_space<vmem>>, %arg4: memref<2x32x96xbf16, #tpu.memory_space<vmem>>, %arg5: memref<2x1x96xf32, #tpu.memory_space<vmem>>, %arg6: memref<2x32x32xbf16, #tpu.memory_space<vmem>>, %arg7: memref<2x1x32xf32, #tpu.memory_space<vmem>>, %arg8: memref<2x1x32xf32, #tpu.memory_space<vmem>>, %arg9: memref<2x1x32xf32, #tpu.memory_space<vmem>>, %arg10: memref<2x32x128xbf16, #tpu.memory_space<vmem>>, %arg11: memref<2x1x128xf32, #tpu.memory_space<vmem>>, %arg12: memref<2x128x32xbf16, #tpu.memory_space<vmem>>, %arg13: memref<2x1x32xf32, #tpu.memory_space<vmem>>, %arg14: memref<2x1x32xf32, #tpu.memory_space<vmem>>, %arg15: memref<2x1x32xf32, #tpu.memory_space<vmem>>, %arg16: memref<32x16xbf16, #tpu.memory_space<vmem>>, %arg17: memref<1x16xf32, #tpu.memory_space<vmem>>, %arg18: memref<1x16xf32, #tpu.memory_space<vmem>>, %arg19: memref<17x32xf32, #tpu.memory_space<vmem>>) attributes {dimension_semantics = [#tpu.dimension_semantics<arbitrary>], iteration_bounds = array<i64: 1>, scalar_prefetch = 0 : i64, scratch_operands = 1 : i64, tpu.core_type = #tpu.core_type<tc>, window_params = [{pipeline_mode = #tpu.pipeline_mode<synchronous>, transform_indices = @transform_0, window_bounds = array<i64: 17, 24>}, {pipeline_mode = #tpu.pipeline_mode<synchronous>, transform_indices = @transform_1, window_bounds = array<i64: 17, 32>}, {pipeline_mode = #tpu.pipeline_mode<synchronous>, transform_indices = @transform_2, window_bounds = array<i64: 24, 32>}, {pipeline_mode = #tpu.pipeline_mode<synchronous>, transform_indices = @transform_3, window_bounds = array<i64: 2, 32, 96>}, {pipeline_mode = #tpu.pipeline_mode<synchronous>, transform_indices = @transform_4, window_bounds = array<i64: 2, 1, 96>}, {pipeline_mode = #tpu.pipeline_mode<synchronous>, transform_indices = @transform_5, window_bounds = array<i64: 2, 32, 32>}, {pipeline_mode = #tpu.pipeline_mode<synchronous>, transform_indices = @transform_6, window_bounds = array<i64: 2, 1, 32>}, {pipeline_mode = #tpu.pipeline_mode<synchronous>, transform_indices = @transform_7, window_bounds = array<i64: 2, 1, 32>}, {pipeline_mode = #tpu.pipeline_mode<synchronous>, transform_indices = @transform_8, window_bounds = array<i64: 2, 1, 32>}, {pipeline_mode = #tpu.pipeline_mode<synchronous>, transform_indices = @transform_9, window_bounds = array<i64: 2, 32, 128>}, {pipeline_mode = #tpu.pipeline_mode<synchronous>, transform_indices = @transform_10, window_bounds = array<i64: 2, 1, 128>}, {pipeline_mode = #tpu.pipeline_mode<synchronous>, transform_indices = @transform_11, window_bounds = array<i64: 2, 128, 32>}, {pipeline_mode = #tpu.pipeline_mode<synchronous>, transform_indices = @transform_12, window_bounds = array<i64: 2, 1, 32>}, {pipeline_mode = #tpu.pipeline_mode<synchronous>, transform_indices = @transform_13, window_bounds = array<i64: 2, 1, 32>}, {pipeline_mode = #tpu.pipeline_mode<synchronous>, transform_indices = @transform_14, window_bounds = array<i64: 2, 1, 32>}, {pipeline_mode = #tpu.pipeline_mode<synchronous>, transform_indices = @transform_15, window_bounds = array<i64: 32, 16>}, {pipeline_mode = #tpu.pipeline_mode<synchronous>, transform_indices = @transform_16, window_bounds = array<i64: 1, 16>}, {pipeline_mode = #tpu.pipeline_mode<synchronous>, transform_indices = @transform_17, window_bounds = array<i64: 1, 16>}]} {
    %c0 = arith.constant 0 : index
    %c0_0 = arith.constant 0 : index
    %0 = vector.load %arg1[%c0, %c0_0] : memref<17x24xf32, #tpu.memory_space<vmem>>, vector<17x24xf32>
    %1 = arith.truncf %0 : vector<17x24xf32> to vector<17x24xbf16>
    %c0_1 = arith.constant 0 : index
    %c0_2 = arith.constant 0 : index
    %2 = vector.load %arg3[%c0_1, %c0_2] : memref<24x32xbf16, #tpu.memory_space<vmem>>, vector<24x32xbf16>
    %cst = arith.constant dense<0.000000e+00> : vector<17x32xf32>
    %3 = tpu.matmul %1, %2, %cst {dimension_numbers = #tpu.dot_dimension_numbers<[1], [0], [0], [1], [0, 0, 1, 1], [], []>} : vector<17x24xbf16>, vector<24x32xbf16>, vector<17x32xf32> -> vector<17x32xf32>
    %c0_3 = arith.constant 0 : index
    %c0_4 = arith.constant 0 : index
    %4 = vector.load %arg2[%c0_3, %c0_4] : memref<17x32xf32, #tpu.memory_space<vmem>>, vector<17x32xf32>
    %5 = arith.addf %3, %4 : vector<17x32xf32>
    %6 = arith.truncf %5 : vector<17x32xf32> to vector<17x32xbf16>
    %c0_5 = arith.constant 0 : index
    %c0_6 = arith.constant 0 : index
    %c0_7 = arith.constant 0 : index
    %7 = vector.load %arg4[%c0_5, %c0_6, %c0_7] : memref<2x32x96xbf16, #tpu.memory_space<vmem>>, vector<1x32x96xbf16>
    %8 = vector.shape_cast %7 : vector<1x32x96xbf16> to vector<32x96xbf16>
    %cst_8 = arith.constant dense<0.000000e+00> : vector<17x96xf32>
    %9 = tpu.matmul %6, %8, %cst_8 {dimension_numbers = #tpu.dot_dimension_numbers<[1], [0], [0], [1], [0, 0, 1, 1], [], []>} : vector<17x32xbf16>, vector<32x96xbf16>, vector<17x96xf32> -> vector<17x96xf32>
    %c0_9 = arith.constant 0 : index
    %c0_10 = arith.constant 0 : index
    %c0_11 = arith.constant 0 : index
    %10 = vector.load %arg5[%c0_9, %c0_10, %c0_11] : memref<2x1x96xf32, #tpu.memory_space<vmem>>, vector<1x1x96xf32>
    %11 = vector.shape_cast %10 : vector<1x1x96xf32> to vector<1x96xf32>
    %12 = vector.broadcast %11 : vector<1x96xf32> to vector<17x96xf32>
    %13 = arith.addf %9, %12 : vector<17x96xf32>
    %14 = vector.extract_strided_slice %13 {offsets = [0, 0], sizes = [17, 8], strides = [1, 1]} : vector<17x96xf32> to vector<17x8xf32>
    %15 = arith.truncf %14 : vector<17x8xf32> to vector<17x8xbf16>
    %16 = vector.extract_strided_slice %13 {offsets = [0, 32], sizes = [17, 8], strides = [1, 1]} : vector<17x96xf32> to vector<17x8xf32>
    %17 = arith.truncf %16 : vector<17x8xf32> to vector<17x8xbf16>
    %18 = vector.extract_strided_slice %13 {offsets = [0, 64], sizes = [17, 8], strides = [1, 1]} : vector<17x96xf32> to vector<17x8xf32>
    %19 = arith.truncf %18 : vector<17x8xf32> to vector<17x8xbf16>
    %cst_12 = arith.constant dense<0.000000e+00> : vector<17x17xf32>
    %20 = tpu.matmul %15, %17, %cst_12 {dimension_numbers = #tpu.dot_dimension_numbers<[1], [1], [0], [0], [0, 0, 1, 0], [], []>} : vector<17x8xbf16>, vector<17x8xbf16>, vector<17x17xf32> -> vector<17x17xf32>
    %cst_13 = arith.constant 0.353553385 : f32
    %21 = vector.broadcast %cst_13 : f32 to vector<17x17xf32>
    %22 = arith.mulf %20, %21 : vector<17x17xf32>
    %cst_14 = arith.constant dense<0xFF800000> : vector<17xf32>
    %23 = vector.multi_reduction <maximumf>, %22, %cst_14 [1] : vector<17x17xf32> to vector<17xf32>
    %24 = vector.shape_cast %23 : vector<17xf32> to vector<17x1xf32>
    %25 = vector.broadcast %24 : vector<17x1xf32> to vector<17x17xf32>
    %26 = arith.subf %22, %25 : vector<17x17xf32>
    %27 = math.exp %26 : vector<17x17xf32>
    %cst_15 = arith.constant dense<0.000000e+00> : vector<17xf32>
    %28 = vector.multi_reduction <add>, %27, %cst_15 [1] : vector<17x17xf32> to vector<17xf32>
    %29 = vector.shape_cast %28 : vector<17xf32> to vector<17x1xf32>
    %30 = tpu.reciprocal %29 {approx = true} : vector<17x1xf32> -> vector<17x1xf32>
    %31 = vector.broadcast %30 : vector<17x1xf32> to vector<17x17xf32>
    %32 = arith.mulf %27, %31 : vector<17x17xf32>
    %33 = arith.truncf %32 : vector<17x17xf32> to vector<17x17xbf16>
    %cst_16 = arith.constant dense<0.000000e+00> : vector<17x8xf32>
    %34 = tpu.matmul %33, %19, %cst_16 {dimension_numbers = #tpu.dot_dimension_numbers<[1], [0], [0], [1], [0, 0, 1, 1], [], []>} : vector<17x17xbf16>, vector<17x8xbf16>, vector<17x8xf32> -> vector<17x8xf32>
    %c0_17 = arith.constant 0 : index
    %c0_18 = arith.constant 0 : index
    %35 = vector.load %arg19[%c0_17, %c0_18] : memref<17x32xf32, #tpu.memory_space<vmem>>, vector<17x8xf32>
    tpu.vector_store %arg19[%c0_17, %c0_18], %34 {strides = array<i32>} : memref<17x32xf32, #tpu.memory_space<vmem>>, vector<17x8xf32>,
    %36 = vector.extract_strided_slice %13 {offsets = [0, 8], sizes = [17, 8], strides = [1, 1]} : vector<17x96xf32> to vector<17x8xf32>
    %37 = arith.truncf %36 : vector<17x8xf32> to vector<17x8xbf16>
    %38 = vector.extract_strided_slice %13 {offsets = [0, 40], sizes = [17, 8], strides = [1, 1]} : vector<17x96xf32> to vector<17x8xf32>
    %39 = arith.truncf %38 : vector<17x8xf32> to vector<17x8xbf16>
    %40 = vector.extract_strided_slice %13 {offsets = [0, 72], sizes = [17, 8], strides = [1, 1]} : vector<17x96xf32> to vector<17x8xf32>
    %41 = arith.truncf %40 : vector<17x8xf32> to vector<17x8xbf16>
    %cst_19 = arith.constant dense<0.000000e+00> : vector<17x17xf32>
    %42 = tpu.matmul %37, %39, %cst_19 {dimension_numbers = #tpu.dot_dimension_numbers<[1], [1], [0], [0], [0, 0, 1, 0], [], []>} : vector<17x8xbf16>, vector<17x8xbf16>, vector<17x17xf32> -> vector<17x17xf32>
    %cst_20 = arith.constant 0.353553385 : f32
    %43 = vector.broadcast %cst_20 : f32 to vector<17x17xf32>
    %44 = arith.mulf %42, %43 : vector<17x17xf32>
    %cst_21 = arith.constant dense<0xFF800000> : vector<17xf32>
    %45 = vector.multi_reduction <maximumf>, %44, %cst_21 [1] : vector<17x17xf32> to vector<17xf32>
    %46 = vector.shape_cast %45 : vector<17xf32> to vector<17x1xf32>
    %47 = vector.broadcast %46 : vector<17x1xf32> to vector<17x17xf32>
    %48 = arith.subf %44, %47 : vector<17x17xf32>
    %49 = math.exp %48 : vector<17x17xf32>
    %cst_22 = arith.constant dense<0.000000e+00> : vector<17xf32>
    %50 = vector.multi_reduction <add>, %49, %cst_22 [1] : vector<17x17xf32> to vector<17xf32>
    %51 = vector.shape_cast %50 : vector<17xf32> to vector<17x1xf32>
    %52 = tpu.reciprocal %51 {approx = true} : vector<17x1xf32> -> vector<17x1xf32>
    %53 = vector.broadcast %52 : vector<17x1xf32> to vector<17x17xf32>
    %54 = arith.mulf %49, %53 : vector<17x17xf32>
    %55 = arith.truncf %54 : vector<17x17xf32> to vector<17x17xbf16>
    %cst_23 = arith.constant dense<0.000000e+00> : vector<17x8xf32>
    %56 = tpu.matmul %55, %41, %cst_23 {dimension_numbers = #tpu.dot_dimension_numbers<[1], [0], [0], [1], [0, 0, 1, 1], [], []>} : vector<17x17xbf16>, vector<17x8xbf16>, vector<17x8xf32> -> vector<17x8xf32>
    %c0_24 = arith.constant 0 : index
    %c8 = arith.constant 8 : index
    %57 = vector.load %arg19[%c0_24, %c8] : memref<17x32xf32, #tpu.memory_space<vmem>>, vector<17x8xf32>
    tpu.vector_store %arg19[%c0_24, %c8], %56 {strides = array<i32>} : memref<17x32xf32, #tpu.memory_space<vmem>>, vector<17x8xf32>,
    %58 = vector.extract_strided_slice %13 {offsets = [0, 16], sizes = [17, 8], strides = [1, 1]} : vector<17x96xf32> to vector<17x8xf32>
    %59 = arith.truncf %58 : vector<17x8xf32> to vector<17x8xbf16>
    %60 = vector.extract_strided_slice %13 {offsets = [0, 48], sizes = [17, 8], strides = [1, 1]} : vector<17x96xf32> to vector<17x8xf32>
    %61 = arith.truncf %60 : vector<17x8xf32> to vector<17x8xbf16>
    %62 = vector.extract_strided_slice %13 {offsets = [0, 80], sizes = [17, 8], strides = [1, 1]} : vector<17x96xf32> to vector<17x8xf32>
    %63 = arith.truncf %62 : vector<17x8xf32> to vector<17x8xbf16>
    %cst_25 = arith.constant dense<0.000000e+00> : vector<17x17xf32>
    %64 = tpu.matmul %59, %61, %cst_25 {dimension_numbers = #tpu.dot_dimension_numbers<[1], [1], [0], [0], [0, 0, 1, 0], [], []>} : vector<17x8xbf16>, vector<17x8xbf16>, vector<17x17xf32> -> vector<17x17xf32>
    %cst_26 = arith.constant 0.353553385 : f32
    %65 = vector.broadcast %cst_26 : f32 to vector<17x17xf32>
    %66 = arith.mulf %64, %65 : vector<17x17xf32>
    %cst_27 = arith.constant dense<0xFF800000> : vector<17xf32>
    %67 = vector.multi_reduction <maximumf>, %66, %cst_27 [1] : vector<17x17xf32> to vector<17xf32>
    %68 = vector.shape_cast %67 : vector<17xf32> to vector<17x1xf32>
    %69 = vector.broadcast %68 : vector<17x1xf32> to vector<17x17xf32>
    %70 = arith.subf %66, %69 : vector<17x17xf32>
    %71 = math.exp %70 : vector<17x17xf32>
    %cst_28 = arith.constant dense<0.000000e+00> : vector<17xf32>
    %72 = vector.multi_reduction <add>, %71, %cst_28 [1] : vector<17x17xf32> to vector<17xf32>
    %73 = vector.shape_cast %72 : vector<17xf32> to vector<17x1xf32>
    %74 = tpu.reciprocal %73 {approx = true} : vector<17x1xf32> -> vector<17x1xf32>
    %75 = vector.broadcast %74 : vector<17x1xf32> to vector<17x17xf32>
    %76 = arith.mulf %71, %75 : vector<17x17xf32>
    %77 = arith.truncf %76 : vector<17x17xf32> to vector<17x17xbf16>
    %cst_29 = arith.constant dense<0.000000e+00> : vector<17x8xf32>
    %78 = tpu.matmul %77, %63, %cst_29 {dimension_numbers = #tpu.dot_dimension_numbers<[1], [0], [0], [1], [0, 0, 1, 1], [], []>} : vector<17x17xbf16>, vector<17x8xbf16>, vector<17x8xf32> -> vector<17x8xf32>
    %c0_30 = arith.constant 0 : index
    %c16 = arith.constant 16 : index
    %79 = vector.load %arg19[%c0_30, %c16] : memref<17x32xf32, #tpu.memory_space<vmem>>, vector<17x8xf32>
    tpu.vector_store %arg19[%c0_30, %c16], %78 {strides = array<i32>} : memref<17x32xf32, #tpu.memory_space<vmem>>, vector<17x8xf32>,
    %80 = vector.extract_strided_slice %13 {offsets = [0, 24], sizes = [17, 8], strides = [1, 1]} : vector<17x96xf32> to vector<17x8xf32>
    %81 = arith.truncf %80 : vector<17x8xf32> to vector<17x8xbf16>
    %82 = vector.extract_strided_slice %13 {offsets = [0, 56], sizes = [17, 8], strides = [1, 1]} : vector<17x96xf32> to vector<17x8xf32>
    %83 = arith.truncf %82 : vector<17x8xf32> to vector<17x8xbf16>
    %84 = vector.extract_strided_slice %13 {offsets = [0, 88], sizes = [17, 8], strides = [1, 1]} : vector<17x96xf32> to vector<17x8xf32>
    %85 = arith.truncf %84 : vector<17x8xf32> to vector<17x8xbf16>
    %cst_31 = arith.constant dense<0.000000e+00> : vector<17x17xf32>
    %86 = tpu.matmul %81, %83, %cst_31 {dimension_numbers = #tpu.dot_dimension_numbers<[1], [1], [0], [0], [0, 0, 1, 0], [], []>} : vector<17x8xbf16>, vector<17x8xbf16>, vector<17x17xf32> -> vector<17x17xf32>
    %cst_32 = arith.constant 0.353553385 : f32
    %87 = vector.broadcast %cst_32 : f32 to vector<17x17xf32>
    %88 = arith.mulf %86, %87 : vector<17x17xf32>
    %cst_33 = arith.constant dense<0xFF800000> : vector<17xf32>
    %89 = vector.multi_reduction <maximumf>, %88, %cst_33 [1] : vector<17x17xf32> to vector<17xf32>
    %90 = vector.shape_cast %89 : vector<17xf32> to vector<17x1xf32>
    %91 = vector.broadcast %90 : vector<17x1xf32> to vector<17x17xf32>
    %92 = arith.subf %88, %91 : vector<17x17xf32>
    %93 = math.exp %92 : vector<17x17xf32>
    %cst_34 = arith.constant dense<0.000000e+00> : vector<17xf32>
    %94 = vector.multi_reduction <add>, %93, %cst_34 [1] : vector<17x17xf32> to vector<17xf32>
    %95 = vector.shape_cast %94 : vector<17xf32> to vector<17x1xf32>
    %96 = tpu.reciprocal %95 {approx = true} : vector<17x1xf32> -> vector<17x1xf32>
    %97 = vector.broadcast %96 : vector<17x1xf32> to vector<17x17xf32>
    %98 = arith.mulf %93, %97 : vector<17x17xf32>
    %99 = arith.truncf %98 : vector<17x17xf32> to vector<17x17xbf16>
    %cst_35 = arith.constant dense<0.000000e+00> : vector<17x8xf32>
    %100 = tpu.matmul %99, %85, %cst_35 {dimension_numbers = #tpu.dot_dimension_numbers<[1], [0], [0], [1], [0, 0, 1, 1], [], []>} : vector<17x17xbf16>, vector<17x8xbf16>, vector<17x8xf32> -> vector<17x8xf32>
    %c0_36 = arith.constant 0 : index
    %c24 = arith.constant 24 : index
    %101 = vector.load %arg19[%c0_36, %c24] : memref<17x32xf32, #tpu.memory_space<vmem>>, vector<17x8xf32>
    tpu.vector_store %arg19[%c0_36, %c24], %100 {strides = array<i32>} : memref<17x32xf32, #tpu.memory_space<vmem>>, vector<17x8xf32>,
    %c0_37 = arith.constant 0 : index
    %c0_38 = arith.constant 0 : index
    %102 = vector.load %arg19[%c0_37, %c0_38] : memref<17x32xf32, #tpu.memory_space<vmem>>, vector<17x32xf32>
    %103 = arith.truncf %102 : vector<17x32xf32> to vector<17x32xbf16>
    %c0_39 = arith.constant 0 : index
    %c0_40 = arith.constant 0 : index
    %c0_41 = arith.constant 0 : index
    %104 = vector.load %arg6[%c0_39, %c0_40, %c0_41] : memref<2x32x32xbf16, #tpu.memory_space<vmem>>, vector<1x32x32xbf16>
    %105 = vector.shape_cast %104 : vector<1x32x32xbf16> to vector<32x32xbf16>
    %cst_42 = arith.constant dense<0.000000e+00> : vector<17x32xf32>
    %106 = tpu.matmul %103, %105, %cst_42 {dimension_numbers = #tpu.dot_dimension_numbers<[1], [0], [0], [1], [0, 0, 1, 1], [], []>} : vector<17x32xbf16>, vector<32x32xbf16>, vector<17x32xf32> -> vector<17x32xf32>
    %c0_43 = arith.constant 0 : index
    %c0_44 = arith.constant 0 : index
    %c0_45 = arith.constant 0 : index
    %107 = vector.load %arg7[%c0_43, %c0_44, %c0_45] : memref<2x1x32xf32, #tpu.memory_space<vmem>>, vector<1x1x32xf32>
    %108 = vector.shape_cast %107 : vector<1x1x32xf32> to vector<1x32xf32>
    %109 = vector.broadcast %108 : vector<1x32xf32> to vector<17x32xf32>
    %110 = arith.addf %106, %109 : vector<17x32xf32>
    %111 = arith.addf %5, %110 : vector<17x32xf32>
    %c0_46 = arith.constant 0 : index
    %c0_47 = arith.constant 0 : index
    %c0_48 = arith.constant 0 : index
    %112 = vector.load %arg8[%c0_46, %c0_47, %c0_48] : memref<2x1x32xf32, #tpu.memory_space<vmem>>, vector<1x1x32xf32>
    %113 = vector.shape_cast %112 : vector<1x1x32xf32> to vector<1x32xf32>
    %c0_49 = arith.constant 0 : index
    %c0_50 = arith.constant 0 : index
    %c0_51 = arith.constant 0 : index
    %114 = vector.load %arg9[%c0_49, %c0_50, %c0_51] : memref<2x1x32xf32, #tpu.memory_space<vmem>>, vector<1x1x32xf32>
    %115 = vector.shape_cast %114 : vector<1x1x32xf32> to vector<1x32xf32>
    %cst_52 = arith.constant dense<0.000000e+00> : vector<17xf32>
    %116 = vector.multi_reduction <add>, %111, %cst_52 [1] : vector<17x32xf32> to vector<17xf32>
    %117 = vector.shape_cast %116 : vector<17xf32> to vector<17x1xf32>
    %cst_53 = arith.constant 3.200000e+01 : f32
    %118 = vector.broadcast %cst_53 : f32 to vector<17x1xf32>
    %119 = arith.divf %117, %118 : vector<17x1xf32>
    %120 = vector.broadcast %119 : vector<17x1xf32> to vector<17x32xf32>
    %121 = arith.subf %111, %120 : vector<17x32xf32>
    %122 = arith.mulf %121, %121 : vector<17x32xf32>
    %cst_54 = arith.constant dense<0.000000e+00> : vector<17xf32>
    %123 = vector.multi_reduction <add>, %122, %cst_54 [1] : vector<17x32xf32> to vector<17xf32>
    %124 = vector.shape_cast %123 : vector<17xf32> to vector<17x1xf32>
    %cst_55 = arith.constant 3.200000e+01 : f32
    %125 = vector.broadcast %cst_55 : f32 to vector<17x1xf32>
    %126 = arith.divf %124, %125 : vector<17x1xf32>
    %127 = vector.broadcast %119 : vector<17x1xf32> to vector<17x32xf32>
    %128 = arith.subf %111, %127 : vector<17x32xf32>
    %cst_56 = arith.constant 9.99999974E-6 : f32
    %129 = vector.broadcast %cst_56 : f32 to vector<17x1xf32>
    %130 = arith.addf %126, %129 : vector<17x1xf32>
    %131 = math.rsqrt %130 : vector<17x1xf32>
    %132 = vector.broadcast %131 : vector<17x1xf32> to vector<17x32xf32>
    %133 = arith.mulf %128, %132 : vector<17x32xf32>
    %134 = vector.broadcast %113 : vector<1x32xf32> to vector<17x32xf32>
    %135 = arith.mulf %133, %134 : vector<17x32xf32>
    %136 = vector.broadcast %115 : vector<1x32xf32> to vector<17x32xf32>
    %137 = arith.addf %135, %136 : vector<17x32xf32>
    %138 = arith.truncf %137 : vector<17x32xf32> to vector<17x32xbf16>
    %c0_57 = arith.constant 0 : index
    %c0_58 = arith.constant 0 : index
    %c0_59 = arith.constant 0 : index
    %139 = vector.load %arg10[%c0_57, %c0_58, %c0_59] : memref<2x32x128xbf16, #tpu.memory_space<vmem>>, vector<1x32x128xbf16>
    %140 = vector.shape_cast %139 : vector<1x32x128xbf16> to vector<32x128xbf16>
    %cst_60 = arith.constant dense<0.000000e+00> : vector<17x128xf32>
    %141 = tpu.matmul %138, %140, %cst_60 {dimension_numbers = #tpu.dot_dimension_numbers<[1], [0], [0], [1], [0, 0, 1, 1], [], []>} : vector<17x32xbf16>, vector<32x128xbf16>, vector<17x128xf32> -> vector<17x128xf32>
    %c0_61 = arith.constant 0 : index
    %c0_62 = arith.constant 0 : index
    %c0_63 = arith.constant 0 : index
    %142 = vector.load %arg11[%c0_61, %c0_62, %c0_63] : memref<2x1x128xf32, #tpu.memory_space<vmem>>, vector<1x1x128xf32>
    %143 = vector.shape_cast %142 : vector<1x1x128xf32> to vector<1x128xf32>
    %144 = vector.broadcast %143 : vector<1x128xf32> to vector<17x128xf32>
    %145 = arith.addf %141, %144 : vector<17x128xf32>
    %cst_64 = arith.constant 0.000000e+00 : f32
    %146 = vector.broadcast %cst_64 : f32 to vector<17x128xf32>
    %147 = arith.maximumf %145, %146 : vector<17x128xf32>
    %148 = arith.truncf %147 : vector<17x128xf32> to vector<17x128xbf16>
    %c0_65 = arith.constant 0 : index
    %c0_66 = arith.constant 0 : index
    %c0_67 = arith.constant 0 : index
    %149 = vector.load %arg12[%c0_65, %c0_66, %c0_67] : memref<2x128x32xbf16, #tpu.memory_space<vmem>>, vector<1x128x32xbf16>
    %150 = vector.shape_cast %149 : vector<1x128x32xbf16> to vector<128x32xbf16>
    %cst_68 = arith.constant dense<0.000000e+00> : vector<17x32xf32>
    %151 = tpu.matmul %148, %150, %cst_68 {dimension_numbers = #tpu.dot_dimension_numbers<[1], [0], [0], [1], [0, 0, 1, 1], [], []>} : vector<17x128xbf16>, vector<128x32xbf16>, vector<17x32xf32> -> vector<17x32xf32>
    %c0_69 = arith.constant 0 : index
    %c0_70 = arith.constant 0 : index
    %c0_71 = arith.constant 0 : index
    %152 = vector.load %arg13[%c0_69, %c0_70, %c0_71] : memref<2x1x32xf32, #tpu.memory_space<vmem>>, vector<1x1x32xf32>
    %153 = vector.shape_cast %152 : vector<1x1x32xf32> to vector<1x32xf32>
    %154 = vector.broadcast %153 : vector<1x32xf32> to vector<17x32xf32>
    %155 = arith.addf %151, %154 : vector<17x32xf32>
    %156 = arith.addf %137, %155 : vector<17x32xf32>
    %c0_72 = arith.constant 0 : index
    %c0_73 = arith.constant 0 : index
    %c0_74 = arith.constant 0 : index
    %157 = vector.load %arg14[%c0_72, %c0_73, %c0_74] : memref<2x1x32xf32, #tpu.memory_space<vmem>>, vector<1x1x32xf32>
    %158 = vector.shape_cast %157 : vector<1x1x32xf32> to vector<1x32xf32>
    %c0_75 = arith.constant 0 : index
    %c0_76 = arith.constant 0 : index
    %c0_77 = arith.constant 0 : index
    %159 = vector.load %arg15[%c0_75, %c0_76, %c0_77] : memref<2x1x32xf32, #tpu.memory_space<vmem>>, vector<1x1x32xf32>
    %160 = vector.shape_cast %159 : vector<1x1x32xf32> to vector<1x32xf32>
    %cst_78 = arith.constant dense<0.000000e+00> : vector<17xf32>
    %161 = vector.multi_reduction <add>, %156, %cst_78 [1] : vector<17x32xf32> to vector<17xf32>
    %162 = vector.shape_cast %161 : vector<17xf32> to vector<17x1xf32>
    %cst_79 = arith.constant 3.200000e+01 : f32
    %163 = vector.broadcast %cst_79 : f32 to vector<17x1xf32>
    %164 = arith.divf %162, %163 : vector<17x1xf32>
    %165 = vector.broadcast %164 : vector<17x1xf32> to vector<17x32xf32>
    %166 = arith.subf %156, %165 : vector<17x32xf32>
    %167 = arith.mulf %166, %166 : vector<17x32xf32>
    %cst_80 = arith.constant dense<0.000000e+00> : vector<17xf32>
    %168 = vector.multi_reduction <add>, %167, %cst_80 [1] : vector<17x32xf32> to vector<17xf32>
    %169 = vector.shape_cast %168 : vector<17xf32> to vector<17x1xf32>
    %cst_81 = arith.constant 3.200000e+01 : f32
    %170 = vector.broadcast %cst_81 : f32 to vector<17x1xf32>
    %171 = arith.divf %169, %170 : vector<17x1xf32>
    %172 = vector.broadcast %164 : vector<17x1xf32> to vector<17x32xf32>
    %173 = arith.subf %156, %172 : vector<17x32xf32>
    %cst_82 = arith.constant 9.99999974E-6 : f32
    %174 = vector.broadcast %cst_82 : f32 to vector<17x1xf32>
    %175 = arith.addf %171, %174 : vector<17x1xf32>
    %176 = math.rsqrt %175 : vector<17x1xf32>
    %177 = vector.broadcast %176 : vector<17x1xf32> to vector<17x32xf32>
    %178 = arith.mulf %173, %177 : vector<17x32xf32>
    %179 = vector.broadcast %158 : vector<1x32xf32> to vector<17x32xf32>
    %180 = arith.mulf %178, %179 : vector<17x32xf32>
    %181 = vector.broadcast %160 : vector<1x32xf32> to vector<17x32xf32>
    %182 = arith.addf %180, %181 : vector<17x32xf32>
    %183 = arith.truncf %182 : vector<17x32xf32> to vector<17x32xbf16>
    %c1 = arith.constant 1 : index
    %c0_83 = arith.constant 0 : index
    %c0_84 = arith.constant 0 : index
    %184 = vector.load %arg4[%c1, %c0_83, %c0_84] : memref<2x32x96xbf16, #tpu.memory_space<vmem>>, vector<1x32x96xbf16>
    %185 = vector.shape_cast %184 : vector<1x32x96xbf16> to vector<32x96xbf16>
    %cst_85 = arith.constant dense<0.000000e+00> : vector<17x96xf32>
    %186 = tpu.matmul %183, %185, %cst_85 {dimension_numbers = #tpu.dot_dimension_numbers<[1], [0], [0], [1], [0, 0, 1, 1], [], []>} : vector<17x32xbf16>, vector<32x96xbf16>, vector<17x96xf32> -> vector<17x96xf32>
    %c1_86 = arith.constant 1 : index
    %c0_87 = arith.constant 0 : index
    %c0_88 = arith.constant 0 : index
    %187 = vector.load %arg5[%c1_86, %c0_87, %c0_88] : memref<2x1x96xf32, #tpu.memory_space<vmem>>, vector<1x1x96xf32>
    %188 = vector.shape_cast %187 : vector<1x1x96xf32> to vector<1x96xf32>
    %189 = vector.broadcast %188 : vector<1x96xf32> to vector<17x96xf32>
    %190 = arith.addf %186, %189 : vector<17x96xf32>
    %191 = vector.extract_strided_slice %190 {offsets = [0, 0], sizes = [17, 8], strides = [1, 1]} : vector<17x96xf32> to vector<17x8xf32>
    %192 = arith.truncf %191 : vector<17x8xf32> to vector<17x8xbf16>
    %193 = vector.extract_strided_slice %190 {offsets = [0, 32], sizes = [17, 8], strides = [1, 1]} : vector<17x96xf32> to vector<17x8xf32>
    %194 = arith.truncf %193 : vector<17x8xf32> to vector<17x8xbf16>
    %195 = vector.extract_strided_slice %190 {offsets = [0, 64], sizes = [17, 8], strides = [1, 1]} : vector<17x96xf32> to vector<17x8xf32>
    %196 = arith.truncf %195 : vector<17x8xf32> to vector<17x8xbf16>
    %cst_89 = arith.constant dense<0.000000e+00> : vector<17x17xf32>
    %197 = tpu.matmul %192, %194, %cst_89 {dimension_numbers = #tpu.dot_dimension_numbers<[1], [1], [0], [0], [0, 0, 1, 0], [], []>} : vector<17x8xbf16>, vector<17x8xbf16>, vector<17x17xf32> -> vector<17x17xf32>
    %cst_90 = arith.constant 0.353553385 : f32
    %198 = vector.broadcast %cst_90 : f32 to vector<17x17xf32>
    %199 = arith.mulf %197, %198 : vector<17x17xf32>
    %cst_91 = arith.constant dense<0xFF800000> : vector<17xf32>
    %200 = vector.multi_reduction <maximumf>, %199, %cst_91 [1] : vector<17x17xf32> to vector<17xf32>
    %201 = vector.shape_cast %200 : vector<17xf32> to vector<17x1xf32>
    %202 = vector.broadcast %201 : vector<17x1xf32> to vector<17x17xf32>
    %203 = arith.subf %199, %202 : vector<17x17xf32>
    %204 = math.exp %203 : vector<17x17xf32>
    %cst_92 = arith.constant dense<0.000000e+00> : vector<17xf32>
    %205 = vector.multi_reduction <add>, %204, %cst_92 [1] : vector<17x17xf32> to vector<17xf32>
    %206 = vector.shape_cast %205 : vector<17xf32> to vector<17x1xf32>
    %207 = tpu.reciprocal %206 {approx = true} : vector<17x1xf32> -> vector<17x1xf32>
    %208 = vector.broadcast %207 : vector<17x1xf32> to vector<17x17xf32>
    %209 = arith.mulf %204, %208 : vector<17x17xf32>
    %210 = arith.truncf %209 : vector<17x17xf32> to vector<17x17xbf16>
    %cst_93 = arith.constant dense<0.000000e+00> : vector<17x8xf32>
    %211 = tpu.matmul %210, %196, %cst_93 {dimension_numbers = #tpu.dot_dimension_numbers<[1], [0], [0], [1], [0, 0, 1, 1], [], []>} : vector<17x17xbf16>, vector<17x8xbf16>, vector<17x8xf32> -> vector<17x8xf32>
    %c0_94 = arith.constant 0 : index
    %c0_95 = arith.constant 0 : index
    %212 = vector.load %arg19[%c0_94, %c0_95] : memref<17x32xf32, #tpu.memory_space<vmem>>, vector<17x8xf32>
    tpu.vector_store %arg19[%c0_94, %c0_95], %211 {strides = array<i32>} : memref<17x32xf32, #tpu.memory_space<vmem>>, vector<17x8xf32>,
    %213 = vector.extract_strided_slice %190 {offsets = [0, 8], sizes = [17, 8], strides = [1, 1]} : vector<17x96xf32> to vector<17x8xf32>
    %214 = arith.truncf %213 : vector<17x8xf32> to vector<17x8xbf16>
    %215 = vector.extract_strided_slice %190 {offsets = [0, 40], sizes = [17, 8], strides = [1, 1]} : vector<17x96xf32> to vector<17x8xf32>
    %216 = arith.truncf %215 : vector<17x8xf32> to vector<17x8xbf16>
    %217 = vector.extract_strided_slice %190 {offsets = [0, 72], sizes = [17, 8], strides = [1, 1]} : vector<17x96xf32> to vector<17x8xf32>
    %218 = arith.truncf %217 : vector<17x8xf32> to vector<17x8xbf16>
    %cst_96 = arith.constant dense<0.000000e+00> : vector<17x17xf32>
    %219 = tpu.matmul %214, %216, %cst_96 {dimension_numbers = #tpu.dot_dimension_numbers<[1], [1], [0], [0], [0, 0, 1, 0], [], []>} : vector<17x8xbf16>, vector<17x8xbf16>, vector<17x17xf32> -> vector<17x17xf32>
    %cst_97 = arith.constant 0.353553385 : f32
    %220 = vector.broadcast %cst_97 : f32 to vector<17x17xf32>
    %221 = arith.mulf %219, %220 : vector<17x17xf32>
    %cst_98 = arith.constant dense<0xFF800000> : vector<17xf32>
    %222 = vector.multi_reduction <maximumf>, %221, %cst_98 [1] : vector<17x17xf32> to vector<17xf32>
    %223 = vector.shape_cast %222 : vector<17xf32> to vector<17x1xf32>
    %224 = vector.broadcast %223 : vector<17x1xf32> to vector<17x17xf32>
    %225 = arith.subf %221, %224 : vector<17x17xf32>
    %226 = math.exp %225 : vector<17x17xf32>
    %cst_99 = arith.constant dense<0.000000e+00> : vector<17xf32>
    %227 = vector.multi_reduction <add>, %226, %cst_99 [1] : vector<17x17xf32> to vector<17xf32>
    %228 = vector.shape_cast %227 : vector<17xf32> to vector<17x1xf32>
    %229 = tpu.reciprocal %228 {approx = true} : vector<17x1xf32> -> vector<17x1xf32>
    %230 = vector.broadcast %229 : vector<17x1xf32> to vector<17x17xf32>
    %231 = arith.mulf %226, %230 : vector<17x17xf32>
    %232 = arith.truncf %231 : vector<17x17xf32> to vector<17x17xbf16>
    %cst_100 = arith.constant dense<0.000000e+00> : vector<17x8xf32>
    %233 = tpu.matmul %232, %218, %cst_100 {dimension_numbers = #tpu.dot_dimension_numbers<[1], [0], [0], [1], [0, 0, 1, 1], [], []>} : vector<17x17xbf16>, vector<17x8xbf16>, vector<17x8xf32> -> vector<17x8xf32>
    %c0_101 = arith.constant 0 : index
    %c8_102 = arith.constant 8 : index
    %234 = vector.load %arg19[%c0_101, %c8_102] : memref<17x32xf32, #tpu.memory_space<vmem>>, vector<17x8xf32>
    tpu.vector_store %arg19[%c0_101, %c8_102], %233 {strides = array<i32>} : memref<17x32xf32, #tpu.memory_space<vmem>>, vector<17x8xf32>,
    %235 = vector.extract_strided_slice %190 {offsets = [0, 16], sizes = [17, 8], strides = [1, 1]} : vector<17x96xf32> to vector<17x8xf32>
    %236 = arith.truncf %235 : vector<17x8xf32> to vector<17x8xbf16>
    %237 = vector.extract_strided_slice %190 {offsets = [0, 48], sizes = [17, 8], strides = [1, 1]} : vector<17x96xf32> to vector<17x8xf32>
    %238 = arith.truncf %237 : vector<17x8xf32> to vector<17x8xbf16>
    %239 = vector.extract_strided_slice %190 {offsets = [0, 80], sizes = [17, 8], strides = [1, 1]} : vector<17x96xf32> to vector<17x8xf32>
    %240 = arith.truncf %239 : vector<17x8xf32> to vector<17x8xbf16>
    %cst_103 = arith.constant dense<0.000000e+00> : vector<17x17xf32>
    %241 = tpu.matmul %236, %238, %cst_103 {dimension_numbers = #tpu.dot_dimension_numbers<[1], [1], [0], [0], [0, 0, 1, 0], [], []>} : vector<17x8xbf16>, vector<17x8xbf16>, vector<17x17xf32> -> vector<17x17xf32>
    %cst_104 = arith.constant 0.353553385 : f32
    %242 = vector.broadcast %cst_104 : f32 to vector<17x17xf32>
    %243 = arith.mulf %241, %242 : vector<17x17xf32>
    %cst_105 = arith.constant dense<0xFF800000> : vector<17xf32>
    %244 = vector.multi_reduction <maximumf>, %243, %cst_105 [1] : vector<17x17xf32> to vector<17xf32>
    %245 = vector.shape_cast %244 : vector<17xf32> to vector<17x1xf32>
    %246 = vector.broadcast %245 : vector<17x1xf32> to vector<17x17xf32>
    %247 = arith.subf %243, %246 : vector<17x17xf32>
    %248 = math.exp %247 : vector<17x17xf32>
    %cst_106 = arith.constant dense<0.000000e+00> : vector<17xf32>
    %249 = vector.multi_reduction <add>, %248, %cst_106 [1] : vector<17x17xf32> to vector<17xf32>
    %250 = vector.shape_cast %249 : vector<17xf32> to vector<17x1xf32>
    %251 = tpu.reciprocal %250 {approx = true} : vector<17x1xf32> -> vector<17x1xf32>
    %252 = vector.broadcast %251 : vector<17x1xf32> to vector<17x17xf32>
    %253 = arith.mulf %248, %252 : vector<17x17xf32>
    %254 = arith.truncf %253 : vector<17x17xf32> to vector<17x17xbf16>
    %cst_107 = arith.constant dense<0.000000e+00> : vector<17x8xf32>
    %255 = tpu.matmul %254, %240, %cst_107 {dimension_numbers = #tpu.dot_dimension_numbers<[1], [0], [0], [1], [0, 0, 1, 1], [], []>} : vector<17x17xbf16>, vector<17x8xbf16>, vector<17x8xf32> -> vector<17x8xf32>
    %c0_108 = arith.constant 0 : index
    %c16_109 = arith.constant 16 : index
    %256 = vector.load %arg19[%c0_108, %c16_109] : memref<17x32xf32, #tpu.memory_space<vmem>>, vector<17x8xf32>
    tpu.vector_store %arg19[%c0_108, %c16_109], %255 {strides = array<i32>} : memref<17x32xf32, #tpu.memory_space<vmem>>, vector<17x8xf32>,
    %257 = vector.extract_strided_slice %190 {offsets = [0, 24], sizes = [17, 8], strides = [1, 1]} : vector<17x96xf32> to vector<17x8xf32>
    %258 = arith.truncf %257 : vector<17x8xf32> to vector<17x8xbf16>
    %259 = vector.extract_strided_slice %190 {offsets = [0, 56], sizes = [17, 8], strides = [1, 1]} : vector<17x96xf32> to vector<17x8xf32>
    %260 = arith.truncf %259 : vector<17x8xf32> to vector<17x8xbf16>
    %261 = vector.extract_strided_slice %190 {offsets = [0, 88], sizes = [17, 8], strides = [1, 1]} : vector<17x96xf32> to vector<17x8xf32>
    %262 = arith.truncf %261 : vector<17x8xf32> to vector<17x8xbf16>
    %cst_110 = arith.constant dense<0.000000e+00> : vector<17x17xf32>
    %263 = tpu.matmul %258, %260, %cst_110 {dimension_numbers = #tpu.dot_dimension_numbers<[1], [1], [0], [0], [0, 0, 1, 0], [], []>} : vector<17x8xbf16>, vector<17x8xbf16>, vector<17x17xf32> -> vector<17x17xf32>
    %cst_111 = arith.constant 0.353553385 : f32
    %264 = vector.broadcast %cst_111 : f32 to vector<17x17xf32>
    %265 = arith.mulf %263, %264 : vector<17x17xf32>
    %cst_112 = arith.constant dense<0xFF800000> : vector<17xf32>
    %266 = vector.multi_reduction <maximumf>, %265, %cst_112 [1] : vector<17x17xf32> to vector<17xf32>
    %267 = vector.shape_cast %266 : vector<17xf32> to vector<17x1xf32>
    %268 = vector.broadcast %267 : vector<17x1xf32> to vector<17x17xf32>
    %269 = arith.subf %265, %268 : vector<17x17xf32>
    %270 = math.exp %269 : vector<17x17xf32>
    %cst_113 = arith.constant dense<0.000000e+00> : vector<17xf32>
    %271 = vector.multi_reduction <add>, %270, %cst_113 [1] : vector<17x17xf32> to vector<17xf32>
    %272 = vector.shape_cast %271 : vector<17xf32> to vector<17x1xf32>
    %273 = tpu.reciprocal %272 {approx = true} : vector<17x1xf32> -> vector<17x1xf32>
    %274 = vector.broadcast %273 : vector<17x1xf32> to vector<17x17xf32>
    %275 = arith.mulf %270, %274 : vector<17x17xf32>
    %276 = arith.truncf %275 : vector<17x17xf32> to vector<17x17xbf16>
    %cst_114 = arith.constant dense<0.000000e+00> : vector<17x8xf32>
    %277 = tpu.matmul %276, %262, %cst_114 {dimension_numbers = #tpu.dot_dimension_numbers<[1], [0], [0], [1], [0, 0, 1, 1], [], []>} : vector<17x17xbf16>, vector<17x8xbf16>, vector<17x8xf32> -> vector<17x8xf32>
    %c0_115 = arith.constant 0 : index
    %c24_116 = arith.constant 24 : index
    %278 = vector.load %arg19[%c0_115, %c24_116] : memref<17x32xf32, #tpu.memory_space<vmem>>, vector<17x8xf32>
    tpu.vector_store %arg19[%c0_115, %c24_116], %277 {strides = array<i32>} : memref<17x32xf32, #tpu.memory_space<vmem>>, vector<17x8xf32>,
    %c0_117 = arith.constant 0 : index
    %c0_118 = arith.constant 0 : index
    %279 = vector.load %arg19[%c0_117, %c0_118] : memref<17x32xf32, #tpu.memory_space<vmem>>, vector<17x32xf32>
    %280 = arith.truncf %279 : vector<17x32xf32> to vector<17x32xbf16>
    %c1_119 = arith.constant 1 : index
    %c0_120 = arith.constant 0 : index
    %c0_121 = arith.constant 0 : index
    %281 = vector.load %arg6[%c1_119, %c0_120, %c0_121] : memref<2x32x32xbf16, #tpu.memory_space<vmem>>, vector<1x32x32xbf16>
    %282 = vector.shape_cast %281 : vector<1x32x32xbf16> to vector<32x32xbf16>
    %cst_122 = arith.constant dense<0.000000e+00> : vector<17x32xf32>
    %283 = tpu.matmul %280, %282, %cst_122 {dimension_numbers = #tpu.dot_dimension_numbers<[1], [0], [0], [1], [0, 0, 1, 1], [], []>} : vector<17x32xbf16>, vector<32x32xbf16>, vector<17x32xf32> -> vector<17x32xf32>
    %c1_123 = arith.constant 1 : index
    %c0_124 = arith.constant 0 : index
    %c0_125 = arith.constant 0 : index
    %284 = vector.load %arg7[%c1_123, %c0_124, %c0_125] : memref<2x1x32xf32, #tpu.memory_space<vmem>>, vector<1x1x32xf32>
    %285 = vector.shape_cast %284 : vector<1x1x32xf32> to vector<1x32xf32>
    %286 = vector.broadcast %285 : vector<1x32xf32> to vector<17x32xf32>
    %287 = arith.addf %283, %286 : vector<17x32xf32>
    %288 = arith.addf %182, %287 : vector<17x32xf32>
    %c1_126 = arith.constant 1 : index
    %c0_127 = arith.constant 0 : index
    %c0_128 = arith.constant 0 : index
    %289 = vector.load %arg8[%c1_126, %c0_127, %c0_128] : memref<2x1x32xf32, #tpu.memory_space<vmem>>, vector<1x1x32xf32>
    %290 = vector.shape_cast %289 : vector<1x1x32xf32> to vector<1x32xf32>
    %c1_129 = arith.constant 1 : index
    %c0_130 = arith.constant 0 : index
    %c0_131 = arith.constant 0 : index
    %291 = vector.load %arg9[%c1_129, %c0_130, %c0_131] : memref<2x1x32xf32, #tpu.memory_space<vmem>>, vector<1x1x32xf32>
    %292 = vector.shape_cast %291 : vector<1x1x32xf32> to vector<1x32xf32>
    %cst_132 = arith.constant dense<0.000000e+00> : vector<17xf32>
    %293 = vector.multi_reduction <add>, %288, %cst_132 [1] : vector<17x32xf32> to vector<17xf32>
    %294 = vector.shape_cast %293 : vector<17xf32> to vector<17x1xf32>
    %cst_133 = arith.constant 3.200000e+01 : f32
    %295 = vector.broadcast %cst_133 : f32 to vector<17x1xf32>
    %296 = arith.divf %294, %295 : vector<17x1xf32>
    %297 = vector.broadcast %296 : vector<17x1xf32> to vector<17x32xf32>
    %298 = arith.subf %288, %297 : vector<17x32xf32>
    %299 = arith.mulf %298, %298 : vector<17x32xf32>
    %cst_134 = arith.constant dense<0.000000e+00> : vector<17xf32>
    %300 = vector.multi_reduction <add>, %299, %cst_134 [1] : vector<17x32xf32> to vector<17xf32>
    %301 = vector.shape_cast %300 : vector<17xf32> to vector<17x1xf32>
    %cst_135 = arith.constant 3.200000e+01 : f32
    %302 = vector.broadcast %cst_135 : f32 to vector<17x1xf32>
    %303 = arith.divf %301, %302 : vector<17x1xf32>
    %304 = vector.broadcast %296 : vector<17x1xf32> to vector<17x32xf32>
    %305 = arith.subf %288, %304 : vector<17x32xf32>
    %cst_136 = arith.constant 9.99999974E-6 : f32
    %306 = vector.broadcast %cst_136 : f32 to vector<17x1xf32>
    %307 = arith.addf %303, %306 : vector<17x1xf32>
    %308 = math.rsqrt %307 : vector<17x1xf32>
    %309 = vector.broadcast %308 : vector<17x1xf32> to vector<17x32xf32>
    %310 = arith.mulf %305, %309 : vector<17x32xf32>
    %311 = vector.broadcast %290 : vector<1x32xf32> to vector<17x32xf32>
    %312 = arith.mulf %310, %311 : vector<17x32xf32>
    %313 = vector.broadcast %292 : vector<1x32xf32> to vector<17x32xf32>
    %314 = arith.addf %312, %313 : vector<17x32xf32>
    %315 = arith.truncf %314 : vector<17x32xf32> to vector<17x32xbf16>
    %c1_137 = arith.constant 1 : index
    %c0_138 = arith.constant 0 : index
    %c0_139 = arith.constant 0 : index
    %316 = vector.load %arg10[%c1_137, %c0_138, %c0_139] : memref<2x32x128xbf16, #tpu.memory_space<vmem>>, vector<1x32x128xbf16>
    %317 = vector.shape_cast %316 : vector<1x32x128xbf16> to vector<32x128xbf16>
    %cst_140 = arith.constant dense<0.000000e+00> : vector<17x128xf32>
    %318 = tpu.matmul %315, %317, %cst_140 {dimension_numbers = #tpu.dot_dimension_numbers<[1], [0], [0], [1], [0, 0, 1, 1], [], []>} : vector<17x32xbf16>, vector<32x128xbf16>, vector<17x128xf32> -> vector<17x128xf32>
    %c1_141 = arith.constant 1 : index
    %c0_142 = arith.constant 0 : index
    %c0_143 = arith.constant 0 : index
    %319 = vector.load %arg11[%c1_141, %c0_142, %c0_143] : memref<2x1x128xf32, #tpu.memory_space<vmem>>, vector<1x1x128xf32>
    %320 = vector.shape_cast %319 : vector<1x1x128xf32> to vector<1x128xf32>
    %321 = vector.broadcast %320 : vector<1x128xf32> to vector<17x128xf32>
    %322 = arith.addf %318, %321 : vector<17x128xf32>
    %cst_144 = arith.constant 0.000000e+00 : f32
    %323 = vector.broadcast %cst_144 : f32 to vector<17x128xf32>
    %324 = arith.maximumf %322, %323 : vector<17x128xf32>
    %325 = arith.truncf %324 : vector<17x128xf32> to vector<17x128xbf16>
    %c1_145 = arith.constant 1 : index
    %c0_146 = arith.constant 0 : index
    %c0_147 = arith.constant 0 : index
    %326 = vector.load %arg12[%c1_145, %c0_146, %c0_147] : memref<2x128x32xbf16, #tpu.memory_space<vmem>>, vector<1x128x32xbf16>
    %327 = vector.shape_cast %326 : vector<1x128x32xbf16> to vector<128x32xbf16>
    %cst_148 = arith.constant dense<0.000000e+00> : vector<17x32xf32>
    %328 = tpu.matmul %325, %327, %cst_148 {dimension_numbers = #tpu.dot_dimension_numbers<[1], [0], [0], [1], [0, 0, 1, 1], [], []>} : vector<17x128xbf16>, vector<128x32xbf16>, vector<17x32xf32> -> vector<17x32xf32>
    %c1_149 = arith.constant 1 : index
    %c0_150 = arith.constant 0 : index
    %c0_151 = arith.constant 0 : index
    %329 = vector.load %arg13[%c1_149, %c0_150, %c0_151] : memref<2x1x32xf32, #tpu.memory_space<vmem>>, vector<1x1x32xf32>
    %330 = vector.shape_cast %329 : vector<1x1x32xf32> to vector<1x32xf32>
    %331 = vector.broadcast %330 : vector<1x32xf32> to vector<17x32xf32>
    %332 = arith.addf %328, %331 : vector<17x32xf32>
    %333 = arith.addf %314, %332 : vector<17x32xf32>
    %c1_152 = arith.constant 1 : index
    %c0_153 = arith.constant 0 : index
    %c0_154 = arith.constant 0 : index
    %334 = vector.load %arg14[%c1_152, %c0_153, %c0_154] : memref<2x1x32xf32, #tpu.memory_space<vmem>>, vector<1x1x32xf32>
    %335 = vector.shape_cast %334 : vector<1x1x32xf32> to vector<1x32xf32>
    %c1_155 = arith.constant 1 : index
    %c0_156 = arith.constant 0 : index
    %c0_157 = arith.constant 0 : index
    %336 = vector.load %arg15[%c1_155, %c0_156, %c0_157] : memref<2x1x32xf32, #tpu.memory_space<vmem>>, vector<1x1x32xf32>
    %337 = vector.shape_cast %336 : vector<1x1x32xf32> to vector<1x32xf32>
    %cst_158 = arith.constant dense<0.000000e+00> : vector<17xf32>
    %338 = vector.multi_reduction <add>, %333, %cst_158 [1] : vector<17x32xf32> to vector<17xf32>
    %339 = vector.shape_cast %338 : vector<17xf32> to vector<17x1xf32>
    %cst_159 = arith.constant 3.200000e+01 : f32
    %340 = vector.broadcast %cst_159 : f32 to vector<17x1xf32>
    %341 = arith.divf %339, %340 : vector<17x1xf32>
    %342 = vector.broadcast %341 : vector<17x1xf32> to vector<17x32xf32>
    %343 = arith.subf %333, %342 : vector<17x32xf32>
    %344 = arith.mulf %343, %343 : vector<17x32xf32>
    %cst_160 = arith.constant dense<0.000000e+00> : vector<17xf32>
    %345 = vector.multi_reduction <add>, %344, %cst_160 [1] : vector<17x32xf32> to vector<17xf32>
    %346 = vector.shape_cast %345 : vector<17xf32> to vector<17x1xf32>
    %cst_161 = arith.constant 3.200000e+01 : f32
    %347 = vector.broadcast %cst_161 : f32 to vector<17x1xf32>
    %348 = arith.divf %346, %347 : vector<17x1xf32>
    %349 = vector.broadcast %341 : vector<17x1xf32> to vector<17x32xf32>
    %350 = arith.subf %333, %349 : vector<17x32xf32>
    %cst_162 = arith.constant 9.99999974E-6 : f32
    %351 = vector.broadcast %cst_162 : f32 to vector<17x1xf32>
    %352 = arith.addf %348, %351 : vector<17x1xf32>
    %353 = math.rsqrt %352 : vector<17x1xf32>
    %354 = vector.broadcast %353 : vector<17x1xf32> to vector<17x32xf32>
    %355 = arith.mulf %350, %354 : vector<17x32xf32>
    %356 = vector.broadcast %335 : vector<1x32xf32> to vector<17x32xf32>
    %357 = arith.mulf %355, %356 : vector<17x32xf32>
    %358 = vector.broadcast %337 : vector<1x32xf32> to vector<17x32xf32>
    %359 = arith.addf %357, %358 : vector<17x32xf32>
    %360 = vector.extract_strided_slice %359 {offsets = [0, 0], sizes = [1, 32], strides = [1, 1]} : vector<17x32xf32> to vector<1x32xf32>
    %361 = arith.truncf %360 : vector<1x32xf32> to vector<1x32xbf16>
    %c0_163 = arith.constant 0 : index
    %c0_164 = arith.constant 0 : index
    %362 = vector.load %arg16[%c0_163, %c0_164] : memref<32x16xbf16, #tpu.memory_space<vmem>>, vector<32x16xbf16>
    %cst_165 = arith.constant dense<0.000000e+00> : vector<1x16xf32>
    %363 = tpu.matmul %361, %362, %cst_165 {dimension_numbers = #tpu.dot_dimension_numbers<[1], [0], [0], [1], [0, 0, 1, 1], [], []>} : vector<1x32xbf16>, vector<32x16xbf16>, vector<1x16xf32> -> vector<1x16xf32>
    %c0_166 = arith.constant 0 : index
    %c0_167 = arith.constant 0 : index
    %364 = vector.load %arg17[%c0_166, %c0_167] : memref<1x16xf32, #tpu.memory_space<vmem>>, vector<1x16xf32>
    %365 = arith.addf %363, %364 : vector<1x16xf32>
    %c0_168 = arith.constant 0 : index
    %c0_169 = arith.constant 0 : index
    %366 = vector.load %arg18[%c0_168, %c0_169] : memref<1x16xf32, #tpu.memory_space<vmem>>, vector<1x16xf32>
    tpu.vector_store %arg18[%c0_168, %c0_169], %365 {strides = array<i32>} : memref<1x16xf32, #tpu.memory_space<vmem>>, vector<1x16xf32>,
    return
  }
  func.func @transform_0(%arg0: i32) -> (i32, i32) {
    %c0_i32 = arith.constant 0 : i32
    %c0_i32_0 = arith.constant 0 : i32
    %c0_i32_1 = arith.constant 0 : i32
    return %c0_i32, %c0_i32_0 : i32, i32
  }
  func.func @transform_1(%arg0: i32) -> (i32, i32) {
    %c0_i32 = arith.constant 0 : i32
    %c0_i32_0 = arith.constant 0 : i32
    %c0_i32_1 = arith.constant 0 : i32
    return %c0_i32, %c0_i32_0 : i32, i32
  }
  func.func @transform_2(%arg0: i32) -> (i32, i32) {
    %c0_i32 = arith.constant 0 : i32
    %c0_i32_0 = arith.constant 0 : i32
    %c0_i32_1 = arith.constant 0 : i32
    return %c0_i32, %c0_i32_0 : i32, i32
  }
  func.func @transform_3(%arg0: i32) -> (i32, i32, i32) {
    %c0_i32 = arith.constant 0 : i32
    %c0_i32_0 = arith.constant 0 : i32
    %c0_i32_1 = arith.constant 0 : i32
    %c0_i32_2 = arith.constant 0 : i32
    return %c0_i32, %c0_i32_0, %c0_i32_1 : i32, i32, i32
  }
  func.func @transform_4(%arg0: i32) -> (i32, i32, i32) {
    %c0_i32 = arith.constant 0 : i32
    %c0_i32_0 = arith.constant 0 : i32
    %c0_i32_1 = arith.constant 0 : i32
    %c0_i32_2 = arith.constant 0 : i32
    return %c0_i32, %c0_i32_0, %c0_i32_1 : i32, i32, i32
  }
  func.func @transform_5(%arg0: i32) -> (i32, i32, i32) {
    %c0_i32 = arith.constant 0 : i32
    %c0_i32_0 = arith.constant 0 : i32
    %c0_i32_1 = arith.constant 0 : i32
    %c0_i32_2 = arith.constant 0 : i32
    return %c0_i32, %c0_i32_0, %c0_i32_1 : i32, i32, i32
  }
  func.func @transform_6(%arg0: i32) -> (i32, i32, i32) {
    %c0_i32 = arith.constant 0 : i32
    %c0_i32_0 = arith.constant 0 : i32
    %c0_i32_1 = arith.constant 0 : i32
    %c0_i32_2 = arith.constant 0 : i32
    return %c0_i32, %c0_i32_0, %c0_i32_1 : i32, i32, i32
  }
  func.func @transform_7(%arg0: i32) -> (i32, i32, i32) {
    %c0_i32 = arith.constant 0 : i32
    %c0_i32_0 = arith.constant 0 : i32
    %c0_i32_1 = arith.constant 0 : i32
    %c0_i32_2 = arith.constant 0 : i32
    return %c0_i32, %c0_i32_0, %c0_i32_1 : i32, i32, i32
  }
  func.func @transform_8(%arg0: i32) -> (i32, i32, i32) {
    %c0_i32 = arith.constant 0 : i32
    %c0_i32_0 = arith.constant 0 : i32
    %c0_i32_1 = arith.constant 0 : i32
    %c0_i32_2 = arith.constant 0 : i32
    return %c0_i32, %c0_i32_0, %c0_i32_1 : i32, i32, i32
  }
  func.func @transform_9(%arg0: i32) -> (i32, i32, i32) {
    %c0_i32 = arith.constant 0 : i32
    %c0_i32_0 = arith.constant 0 : i32
    %c0_i32_1 = arith.constant 0 : i32
    %c0_i32_2 = arith.constant 0 : i32
    return %c0_i32, %c0_i32_0, %c0_i32_1 : i32, i32, i32
  }
  func.func @transform_10(%arg0: i32) -> (i32, i32, i32) {
    %c0_i32 = arith.constant 0 : i32
    %c0_i32_0 = arith.constant 0 : i32
    %c0_i32_1 = arith.constant 0 : i32
    %c0_i32_2 = arith.constant 0 : i32
    return %c0_i32, %c0_i32_0, %c0_i32_1 : i32, i32, i32
  }
  func.func @transform_11(%arg0: i32) -> (i32, i32, i32) {
    %c0_i32 = arith.constant 0 : i32
    %c0_i32_0 = arith.constant 0 : i32
    %c0_i32_1 = arith.constant 0 : i32
    %c0_i32_2 = arith.constant 0 : i32
    return %c0_i32, %c0_i32_0, %c0_i32_1 : i32, i32, i32
  }
  func.func @transform_12(%arg0: i32) -> (i32, i32, i32) {
    %c0_i32 = arith.constant 0 : i32
    %c0_i32_0 = arith.constant 0 : i32
    %c0_i32_1 = arith.constant 0 : i32
    %c0_i32_2 = arith.constant 0 : i32
    return %c0_i32, %c0_i32_0, %c0_i32_1 : i32, i32, i32
  }
  func.func @transform_13(%arg0: i32) -> (i32, i32, i32) {
    %c0_i32 = arith.constant 0 : i32
    %c0_i32_0 = arith.constant 0 : i32
    %c0_i32_1 = arith.constant 0 : i32
    %c0_i32_2 = arith.constant 0 : i32
    return %c0_i32, %c0_i32_0, %c0_i32_1 : i32, i32, i32
  }
  func.func @transform_14(%arg0: i32) -> (i32, i32, i32) {
    %c0_i32 = arith.constant 0 : i32
    %c0_i32_0 = arith.constant 0 : i32
    %c0_i32_1 = arith.constant 0 : i32
    %c0_i32_2 = arith.constant 0 : i32
    return %c0_i32, %c0_i32_0, %c0_i32_1 : i32, i32, i32
  }
  func.func @transform_15(%arg0: i32) -> (i32, i32) {
    %c0_i32 = arith.constant 0 : i32
    %c0_i32_0 = arith.constant 0 : i32
    %c0_i32_1 = arith.constant 0 : i32
    return %c0_i32, %c0_i32_0 : i32, i32
  }
  func.func @transform_16(%arg0: i32) -> (i32, i32) {
    %c0_i32 = arith.constant 0 : i32
    %c0_i32_0 = arith.constant 0 : i32
    %c0_i32_1 = arith.constant 0 : i32
    return %c0_i32, %c0_i32_0 : i32, i32
  }
  func.func @transform_17(%arg0: i32) -> (i32, i32) {
    %c0_i32 = arith.constant 0 : i32
    %c0_i32_0 = arith.constant 0 : i32
    %c0_i32_1 = arith.constant 0 : i32
    return %c0_i32, %c0_i32_0 : i32, i32
  }
}

</mosaic_0001>

<bundles_post_ra>
// kernel: simple_transformer_forward.1
= control target key start
LH: loop header
LB: loop body
LE: loop exit
PB: predicated region body
PF: predicated region fallthrough
CT: control target
= control target key end

     0   :  { %s3935_s0 = inlined_call_operand.vmem [shape: f32[17,24], index: 0, kind: input, shape index: {}]   ;;  %s3936_s1 = inlined_call_operand.vmem [shape: f32[17,32], index: 1, kind: input, shape index: {}]   ;;  %s3937_s2 = inlined_call_operand.vmem [shape: bf16[24,32], index: 2, kind: input, shape index: {}]   ;;  %s3938_s3 = inlined_call_operand.vmem [shape: bf16[2,32,96], index: 3, kind: input, shape index: {}]   ;;  %s3939_s4 = inlined_call_operand.vmem [shape: f32[2,1,96], index: 4, kind: input, shape index: {}]   ;;  %s3940_s5 = inlined_call_operand.vmem [shape: bf16[2,32,32], index: 5, kind: input, shape index: {}]   ;;  %s3941_s6 = inlined_call_operand.vmem [shape: f32[2,1,32], index: 6, kind: input, shape index: {}]   ;;  %s3942_s7 = inlined_call_operand.vmem [shape: f32[2,1,32], index: 7, kind: input, shape index: {}]   ;;  %s3943_s8 = inlined_call_operand.vmem [shape: f32[2,1,32], index: 8, kind: input, shape index: {}]   ;;  %s3944_s9 = inlined_call_operand.vmem [shape: bf16[2,32,128], index: 9, kind: input, shape index: {}]   ;;  %s3945_s10 = inlined_call_operand.vmem [shape: f32[2,1,128], index: 10, kind: input, shape index: {}]   ;;  %s3946_s11 = inlined_call_operand.vmem [shape: bf16[2,128,32], index: 11, kind: input, shape index: {}]   ;;  %s3947_s12 = inlined_call_operand.vmem [shape: f32[2,1,32], index: 12, kind: input, shape index: {}]   ;;  %s3948_s13 = inlined_call_operand.vmem [shape: f32[2,1,32], index: 13, kind: input, shape index: {}]   ;;  %s3949_s14 = inlined_call_operand.vmem [shape: f32[2,1,32], index: 14, kind: input, shape index: {}]   ;;  %s3950_s15 = inlined_call_operand.vmem [shape: bf16[32,16], index: 15, kind: input, shape index: {}]   ;;  %s3951_s16 = inlined_call_operand.vmem [shape: f32[1,16], index: 16, kind: input, shape index: {}]   ;;  %s3952_s17 = inlined_call_operand.hbm [shape: f32[1,16], index: 17, kind: output, shape index: {}]  }
   0x1   :  { %3967 = sst [smem:[#allocation6_spill]] %s3935_s0 }
   0x2   :  { %3968 = sst [smem:[#allocation7_spill]] %s3936_s1 }
   0x3   :  { %v3137_v0 = vld [vmem:[%s3937_s2] sm:$0xff]   ;;  %vm85_vm0 = vcmask 1043456   ;;  %v3138_v1 = vld [vmem:[%s3937_s2 + $0x8] ss:$0 sps:$4 sm:$0xff]   ;;  %s3969_s0 = sld [smem:[#allocation6_spill]]  ;;  %vm78_vm1 = vcmask 195584  }
   0x4   :  { %2870 = vmatprep.subr.bf16.mxu0 %v3137_v0  ;;  %v87_v5 = vsel %vm85_vm0, %v3138_v1, 0 }
   0x5   :  { %2871 = vmatpush3.bf16.msra.mxu0 %v3137_v0 }
   0x6   :  { %3102 = vmatprep.subr.msk.bf16.mxu0 %vm85_vm0, %v3138_v1 }
   0x9   :  { %v58_v2 = vld [vmem:[%s3969_s0] sm:$0xff]  ;;  %v59_v3 = vld [vmem:[%s3969_s0 + $0x8] sm:$0xff]  ;;  %v60_v4 = vld [vmem:[%s3969_s0 + $0x10] sm:$0x1]  ;;  %2873 = vmatpush3.bf16.msra.mxu0 %v87_v5 }
   0xa   :  { %v61_v6 = vpack.c.bf16 %v59_v3, %v58_v2  ;;  %v62_v7 = vpack.c.bf16 %v60_v4, %v60_v4 }
   0xc   :  { %2874 = vmatprep.mubr.msk.bf16.mxu0 %vm78_vm1, %v61_v6 }
   0xd   :  { %2875 = vmatmul.mubr.msk.bf16.vlgmr.msra.gmra.mrb[0].mxu0 %vm78_vm1, %v62_v7 }
   0xe   :  { %22 = vsyncpa [#allocation4], 0  ;;  %v3139_v8 = vld [vmem:[%s3938_s3] sm:$0xff]   ;;  %v3140_v9 = vld [vmem:[%s3938_s3 + $0x8] sm:$0xff]   ;;  %s3970_s25 = sld [smem:[#allocation7_spill]]  ;;  %vm162_vm2 = vcmask 261120  }
   0xf   :  { %2878 = vmatprep.subr.bf16.mxu0 %v3139_v8  ;;  %v2628_v23 = vld [vmem:[%s3939_s4] ss:$0 sm:$0xff]  ;;  %vm225_vm3 = vcmask 64512   ;;  %s3309_s18 = smov 96   ;;  %vm296_vm4 = vcmask 131072   ;;  %vm289_vm5 = vcmask 138240  }
  0x10   :  { %2879 = vmatpush3.bf16.msra.mxu0 %v3139_v8  ;;  %s3310_s19 = smov 88   ;;  %s3311_s1 = smov 64   ;;  %vm337_vm6 = vcmask 1040384   ;;  %v3313_v1 = vmov 0   ;;  %vm393_vm7 = vcmask 57344   ;;  %vm575_vm8 = vcmask 130112  }
  0x11   :  { %2880 = vmatprep.subr.bf16.mxu0 %v3140_v9  ;;  %s3312_s2 = smov 120   ;;  %v3496_v2 = vsel %vm337_vm6, 65535, %v3313_v1  ;;  %s3314_s20 = smov 56   ;;  %vm578_vm9 = vcmask 122944   ;;  %vm760_vm10 = vcmask 195712   ;;  %vm763_vm11 = vcmask 188544  }
  0x12   :  { %s3315_s21 = smov 80   ;;  %s3316_s22 = smov 112   ;;  %vm945_vm12 = vcmask 261312   ;;  %vm948_vm13 = vcmask 254144   ;;  %vm1043_vm14 = vcmask 253952   ;;  %vm3325_vm15 = vmmov 0  }
  0x13   :  { %s3317_s23 = smov 48   ;;  %s3965_s24 = smov 72   ;;  %vm2608_vm0 = vcmask 122880  }
  0x14   :  { %2881 = vmatpush3.bf16.msra.mxu0 %v3140_v9  ;;  %v68_v10 = vld [vmem:[%s3970_s25 + $0x10] sm:$0x1]  ;;  %v66_v13 = vld [vmem:[%s3970_s25] sm:$0xff]  ;;  %v67_v14 = vld [vmem:[%s3970_s25 + $0x8] sm:$0xff]  ;;  %s3963_s25 = smov 104   ;;  %s3961_s26 = smov 40  }
  0x15   :  { %s3957_s27 = smov 8   ;;  %s3955_s28 = smov 16  }
  0xe0   :  { %v2876_v11 = vpop.f32.mrb[0].mxu0 }
  0xe1   :  { %v123_v12 = vpop.f32.mrb[1].mxu0  ;;  %v3447_v16 = vadd.f32 %v2876_v11, %v68_v10 }
  0xe2   :  { %v2877_v15 = vpop.f32.mrb[2].mxu0  ;;  %v3449_v18 = vadd.f32 %v123_v12, %v66_v13 }
  0xe3   :  { %v126_v17 = vpop.f32.mrb[3].mxu0  ;;  %v138_v21 = vpack.c.bf16 %v3447_v16, %v3447_v16 }
  0xe4   :  { %v3451_v19 = vadd.f32 %v126_v17, %v67_v14 }
  0xe6   :  { %v137_v20 = vpack.c.bf16 %v3451_v19, %v3449_v18 }
  0xe8   :  { %2882 = vmatprep.mubr.msk.bf16.mxu0 %vm162_vm2, %v137_v20 }
  0xe9   :  { %2883 = vmatmul.mubr.msk.bf16.vlgmr.msra.gmra.mrb[4].mxu0 %vm162_vm2, %v138_v21 }
 0x1bc   :  { %v2884_v22 = vpop.f32.mrb[4].mxu0 }
 0x1bd   :  { %v203_v24 = vpop.f32.mrb[5].mxu0  ;;  %v212_v29 = vadd.f32 %v2884_v22, %v2628_v23 }
 0x1be   :  { %v2885_v25 = vpop.f32.mrb[6].mxu0  ;;  %v204_v27 = vadd.f32 %v2628_v23, %v203_v24 }
 0x1bf   :  { %v206_v26 = vpop.f32.mrb[7].mxu0  ;;  %v3468_v31 = vpack.c.bf16 %v212_v29, %v212_v29 }
 0x1c0   :  { %v207_v28 = vadd.f32 %v2628_v23, %v206_v26 }
 0x1c2   :  { %v3462_v30 = vpack.c.bf16 %v207_v28, %v204_v27 }
 0x1c4   :  { %221 = vrot.lane.b32.xlu0 %v3462_v30, %s3309_s18  ;;  %2890 = vmatprep.mubr.msk.bf16.mxu0 %vm225_vm3, %v3462_v30 }
 0x1c8   :  { %223 = vrot.lane.b32.xlu0 %v3468_v31, %s3309_s18 }
 0x236   :  { %v222_v32 = vpop.permute.xlu0 %221 }
 0x237   :  { %3103 = vmatprep.subr.msk.bf16.mxu0 %vm225_vm3, %v222_v32  ;;  %v233_v33 = vsel %vm225_vm3, %v222_v32, 0 }
 0x238   :  { %2887 = vmatpush3.bf16.xpose.msra.mxu0 %v233_v33 }
 0x23a   :  { %v224_v34 = vpop.permute.xlu0 %223 }
 0x23b   :  { %3104 = vmatprep.subr.msk.bf16.mxu0 %vm225_vm3, %v224_v34  ;;  %v236_v35 = vsel %vm225_vm3, %v224_v34, 0 }
 0x240   :  { %2889 = vmatpush3.bf16.xpose.msra.mxu0 %v236_v35 }
 0x247   :  { %2891 = vmatmul.mubr.msk.bf16.vlgmr.msra.gmra.mrb[8].mxu0 %vm225_vm3, %v3468_v31 }
 0x31a   :  { %v2892_v36 = vpop.f32.mrb[8].mxu0 }
 0x31b   :  { %v288_v37 = vmul.f32 0.35355338, %v2892_v36  ;;  %v272_v38 = vpop.f32.mrb[9].mxu0 }
 0x31c   :  { %v286_v39 = vmul.f32 0.35355338, %v272_v38  ;;  %v2893_v40 = vpop.f32.mrb[10].mxu0 }
 0x31d   :  { %v275_v41 = vpop.f32.mrb[11].mxu0  ;;  %v297_v42 = vsel %vm296_vm4, %v288_v37, -inf }
 0x31e   :  { %v287_v43 = vmul.f32 0.35355338, %v275_v41  ;;  %298 = vmax.xlane.f32.xlu0 %v297_v42  ;;  %v290_v44 = vsel %vm289_vm5, %v286_v39, -inf }
 0x31f   :  { %291 = vmax.xlane.f32.xlu1 %v290_v44 }
 0x320   :  { %v293_v45 = vsel %vm289_vm5, %v287_v43, -inf }
 0x323   :  { %294 = vmax.xlane.f32.xlu1 %v293_v45 }
 0x334   :  { %399 = vrot.lane.b32.xlu0 %v3462_v30, %s3310_s19  ;;  %326 = vrot.lane.b32.xlu1 %v3462_v30, %s3311_s1 }
 0x3ab   :  { %v299_v46 = vpop.xlane.xlu0 %298 }
 0x3ac   :  { %v302_v47 = vsub.f32 %v288_v37, %v299_v46  ;;  %v292_v48 = vpop.xlane.xlu1 %291 }
 0x3ad   :  { %v300_v49 = vsub.f32 %v286_v39, %v292_v48 }
 0x3ae   :  { %v307_v50 = vmul.f32 1.442695, %v302_v47 }
 0x3af   :  { %v303_v51 = vmul.f32 1.442695, %v300_v49  ;;  %v400_v6 = vpop.permute.xlu0 %399 }
 0x3b0   :  { %3169 = vpow2.f32 %v307_v50  ;;  %v295_v52 = vpop.xlane.xlu1 %294  ;;  %v410_v17 = vsel %vm225_vm3, %v400_v6, 0 }
 0x3b1   :  { %v301_v53 = vsub.f32 %v287_v43, %v295_v52  ;;  %3171 = vpow2.f32 %v303_v51 }
 0x3b3   :  { %v305_v54 = vmul.f32 1.442695, %v301_v53 }
 0x3b4   :  { %v327_v55 = vpop.permute.xlu1 %326 }
 0x3b5   :  { %2894 = vmatprep.subr.bf16.mxu1 %v327_v55  ;;  %3173 = vpow2.f32 %v305_v54 }
 0x3b6   :  { %2895 = vmatpush3.bf16.msra.mxu1 %v327_v55 }
 0x3ba   :  { %v3170_v56 = vpop.eup %3169 }
 0x3bb   :  { %v315_v57 = vsel %vm296_vm4, %v3170_v56, 0.0  ;;  %v3172_v58 = vpop.eup %3171 }
 0x3bc   :  { %316 = vadd.xlane.f32.xlu1 %v315_v57  ;;  %v309_v59 = vsel %vm289_vm5, %v3172_v58, 0.0 }
 0x3bf   :  { %v3174_v60 = vpop.eup %3173 }
 0x3c0   :  { %310 = vadd.xlane.f32.xlu1 %v309_v59  ;;  %v312_v61 = vsel %vm289_vm5, %v3174_v60, 0.0 }
 0x3c4   :  { %313 = vadd.xlane.f32.xlu1 %v312_v61 }
 0x3d5   :  { %328 = vrot.lane.b32.xlu1 %v3468_v31, %s3311_s1 }
 0x3d9   :  { %401 = vrot.lane.b32.xlu1 %v3468_v31, %s3310_s19 }
 0x3dd   :  { %395 = vrot.lane.b32.xlu1 %v3462_v30, %s3312_s2 }
 0x3e1   :  { %397 = vrot.lane.b32.xlu1 %v3468_v31, %s3312_s2 }
 0x449   :  { %v317_v62 = vpop.xlane.xlu1 %316 }
 0x44a   :  { %3175 = vrcp.f32 %v317_v62 }
 0x44d   :  { %v311_v63 = vpop.xlane.xlu1 %310 }
 0x44e   :  { %3177 = vrcp.f32 %v311_v63 }
 0x451   :  { %v314_v0 = vpop.xlane.xlu1 %313 }
 0x452   :  { %3179 = vrcp.f32 %v314_v0 }
 0x454   :  { %v3176_v5 = vpop.eup %3175 }
 0x455   :  { %v329_v3 = vpop.permute.xlu1 %328  ;;  %v323_v10 = vmul.f32 %v3176_v5, %v3170_v56 }
 0x456   :  { %v341_v4 = vand.u32 %v3496_v2, %v329_v3 }
 0x457   :  { %v325_v14 = vpack.c.bf16 %v323_v10, %v323_v10 }
 0x458   :  { %2896 = vmatprep.subr.bf16.mxu1 %v341_v4  ;;  %v3178_v7 = vpop.eup %3177 }
 0x459   :  { %2897 = vmatpush3.bf16.msra.mxu1 %v341_v4  ;;  %v402_v9 = vpop.permute.xlu1 %401  ;;  %v321_v11 = vmul.f32 %v3178_v7, %v3172_v58 }
 0x45a   :  { %3105 = vmatprep.subr.msk.bf16.mxu1 %vm225_vm3, %v400_v6  ;;  %v413_v20 = vsel %vm225_vm3, %v402_v9, 0 }
 0x45c   :  { %v3180_v8 = vpop.eup %3179 }
 0x45d   :  { %v322_v12 = vmul.f32 %v3180_v8, %v3174_v60  ;;  %v396_v15 = vpop.permute.xlu1 %395 }
 0x45f   :  { %v324_v13 = vpack.c.bf16 %v322_v12, %v321_v11 }
 0x461   :  { %2898 = vmatprep.mubr.msk.bf16.mxu1 %vm289_vm5, %v324_v13  ;;  %v398_v21 = vpop.permute.xlu1 %397 }
 0x462   :  { %2899 = vmatmul.mubr.msk.bf16.vlgmr.msra.gmra.mrb[0].mxu1 %vm289_vm5, %v325_v14 }
 0x463   :  { %2903 = vmatpush3.bf16.xpose.msra.mxu1 %v410_v17  ;;  %2906 = vmatprep.mubr.msk.bf16.mxu1 %vm225_vm3, %v396_v15 }
 0x464   :  { %3106 = vmatprep.subr.msk.bf16.mxu1 %vm225_vm3, %v402_v9 }
 0x46b   :  { %2905 = vmatpush3.bf16.xpose.msra.mxu1 %v413_v20 }
 0x472   :  { %2907 = vmatmul.mubr.msk.bf16.vlgmr.msra.gmra.mrb[4].mxu1 %vm225_vm3, %v398_v21 }
 0x535   :  { %v2900_v22 = vpop.f32.mrb[0].mxu1 }
 0x536   :  { %394 = vst.msk [vmem:[#allocation2 + $0x10] sm:$0x1] %vm393_vm7, %v2900_v22  ;;  %v377_v23 = vpop.f32.mrb[1].mxu1 }
 0x537   :  { %391 = vst.msk [vmem:[#allocation2] sm:$0xff] %vm225_vm3, %v377_v23  ;;  %v2901_v24 = vpop.f32.mrb[2].mxu1 }
 0x538   :  { %v380_v25 = vpop.f32.mrb[3].mxu1 }
 0x539   :  { %392 = vst.msk [vmem:[#allocation2 + $0x8] sm:$0xff] %vm225_vm3, %v380_v25 }
 0x545   :  { %v2908_v26 = vpop.f32.mrb[4].mxu1 }
 0x546   :  { %v449_v27 = vpop.f32.mrb[5].mxu1  ;;  %v465_v33 = vmul.f32 0.35355338, %v2908_v26 }
 0x547   :  { %v463_v28 = vmul.f32 0.35355338, %v449_v27  ;;  %v2909_v29 = vpop.f32.mrb[6].mxu1 }
 0x548   :  { %v452_v32 = vpop.f32.mrb[7].mxu1  ;;  %v472_v37 = vsel %vm296_vm4, %v465_v33, -inf }
 0x549   :  { %v464_v34 = vmul.f32 0.35355338, %v452_v32  ;;  %v466_v35 = vsel %vm289_vm5, %v463_v28, -inf }
 0x54a   :  { %467 = vmax.xlane.f32.xlu1 %v466_v35 }
 0x54b   :  { %v469_v36 = vsel %vm289_vm5, %v464_v34, -inf }
 0x54c   :  { %470 = vmax.xlane.f32.xlu0 %v469_v36 }
 0x54e   :  { %473 = vmax.xlane.f32.xlu1 %v472_v37 }
 0x55f   :  { %501 = vrot.lane.b32.xlu1 %v3462_v30, %s3314_s20 }
 0x5d7   :  { %v468_v38 = vpop.xlane.xlu1 %467 }
 0x5d8   :  { %v475_v40 = vsub.f32 %v463_v28, %v468_v38 }
 0x5d9   :  { %v471_v39 = vpop.xlane.xlu0 %470 }
 0x5da   :  { %v476_v41 = vsub.f32 %v464_v34, %v471_v39  ;;  %v478_v45 = vmul.f32 1.442695, %v475_v40 }
 0x5db   :  { %v474_v42 = vpop.xlane.xlu1 %473 }
 0x5dc   :  { %v480_v43 = vmul.f32 1.442695, %v476_v41  ;;  %v477_v44 = vsub.f32 %v465_v33, %v474_v42 }
 0x5de   :  { %3181 = vpow2.f32 %v480_v43  ;;  %v482_v46 = vmul.f32 1.442695, %v477_v44 }
 0x5df   :  { %v502_v47 = vpop.permute.xlu1 %501 }
 0x5e0   :  { %3183 = vpow2.f32 %v482_v46  ;;  %2910 = vmatprep.subr.bf16.mxu0 %v502_v47 }
 0x5e1   :  { %2911 = vmatpush3.bf16.msra.mxu0 %v502_v47  ;;  %3185 = vpow2.f32 %v478_v45 }
 0x5e8   :  { %v3182_v48 = vpop.eup %3181 }
 0x5e9   :  { %v487_v49 = vsel %vm289_vm5, %v3182_v48, 0.0 }
 0x5ea   :  { %v3184_v50 = vpop.eup %3183  ;;  %488 = vadd.xlane.f32.xlu1 %v487_v49 }
 0x5eb   :  { %v490_v51 = vsel %vm296_vm4, %v3184_v50, 0.0  ;;  %v3186_v52 = vpop.eup %3185 }
 0x5ec   :  { %491 = vadd.xlane.f32.xlu0 %v490_v51  ;;  %v484_v53 = vsel %vm289_vm5, %v3186_v52, 0.0 }
 0x5f0   :  { %485 = vadd.xlane.f32.xlu0 %v484_v53 }
 0x5fb   :  { %584 = vrot.lane.b32.xlu1 %v3462_v30, %s3315_s21 }
 0x5ff   :  { %586 = vrot.lane.b32.xlu1 %v3468_v31, %s3315_s21 }
 0x603   :  { %582 = vrot.lane.b32.xlu1 %v3468_v31, %s3316_s22 }
 0x606   :  { %503 = vrot.lane.b32.xlu0 %v3468_v31, %s3314_s20 }
 0x60a   :  { %580 = vrot.lane.b32.xlu0 %v3462_v30, %s3316_s22 }
 0x677   :  { %v489_v54 = vpop.xlane.xlu1 %488 }
 0x679   :  { %v492_v55 = vpop.xlane.xlu0 %491 }
 0x67a   :  { %3187 = vrcp.f32 %v492_v55 }
 0x67b   :  { %3189 = vrcp.f32 %v489_v54  ;;  %v585_v60 = vpop.permute.xlu1 %584 }
 0x67c   :  { %v595_v6 = vsel %vm225_vm3, %v585_v60, 0 }
 0x67d   :  { %v486_v56 = vpop.xlane.xlu0 %485 }
 0x67e   :  { %3191 = vrcp.f32 %v486_v56 }
 0x67f   :  { %v587_v7 = vpop.permute.xlu1 %586 }
 0x680   :  { %v598_v8 = vsel %vm225_vm3, %v587_v7, 0 }
 0x681   :  { %v504_v57 = vpop.permute.xlu0 %503 }
 0x682   :  { %v513_v58 = vand.u32 %v504_v57, %v3496_v2 }
 0x683   :  { %v583_v9 = vpop.permute.xlu1 %582 }
 0x684   :  { %2912 = vmatprep.subr.bf16.mxu0 %v513_v58  ;;  %v3188_v59 = vpop.eup %3187 }
 0x685   :  { %2913 = vmatpush3.bf16.msra.mxu0 %v513_v58  ;;  %v3190_v61 = vpop.eup %3189  ;;  %v498_v63 = vmul.f32 %v3188_v59, %v3184_v50  ;;  %v581_v5 = vpop.permute.xlu0 %580 }
 0x686   :  { %3107 = vmatprep.subr.msk.bf16.mxu0 %vm225_vm3, %v585_v60  ;;  %v497_v1 = vmul.f32 %v3190_v61, %v3182_v48 }
 0x687   :  { %v500_v4 = vpack.c.bf16 %v498_v63, %v498_v63 }
 0x688   :  { %v3192_v62 = vpop.eup %3191 }
 0x689   :  { %v496_v0 = vmul.f32 %v3192_v62, %v3186_v52 }
 0x68b   :  { %v499_v3 = vpack.c.bf16 %v497_v1, %v496_v0 }
 0x68d   :  { %2914 = vmatprep.mubr.msk.bf16.mxu0 %vm289_vm5, %v499_v3 }
 0x68e   :  { %2915 = vmatmul.mubr.msk.bf16.vlgmr.msra.gmra.mrb[12].mxu0 %vm289_vm5, %v500_v4 }
 0x68f   :  { %2919 = vmatpush3.bf16.xpose.msra.mxu0 %v595_v6  ;;  %2922 = vmatprep.mubr.msk.bf16.mxu0 %vm225_vm3, %v581_v5 }
 0x690   :  { %3108 = vmatprep.subr.msk.bf16.mxu0 %vm225_vm3, %v587_v7 }
 0x697   :  { %2921 = vmatpush3.bf16.xpose.msra.mxu0 %v598_v8 }
 0x69e   :  { %2923 = vmatmul.mubr.msk.bf16.vlgmr.msra.gmra.mrb[16].mxu0 %vm225_vm3, %v583_v9 }
 0x761   :  { %v3537_v10 = vpop.f32.mrb[12].mxu0 }
 0x762   :  { %v3539_v11 = vpop.f32.mrb[13].mxu0 }
 0x763   :  { %v2917_v12 = vpop.f32.mrb[14].mxu0 }
 0x764   :  { %v3541_v13 = vpop.f32.mrb[15].mxu0 }
 0x771   :  { %v2924_v14 = vpop.f32.mrb[16].mxu0 }
 0x772   :  { %v634_v15 = vpop.f32.mrb[17].mxu0  ;;  %v650_v22 = vmul.f32 0.35355338, %v2924_v14 }
 0x773   :  { %v648_v17 = vmul.f32 0.35355338, %v634_v15  ;;  %v2925_v20 = vpop.f32.mrb[18].mxu0 }
 0x774   :  { %v637_v21 = vpop.f32.mrb[19].mxu0  ;;  %v657_v26 = vsel %vm296_vm4, %v650_v22, -inf }
 0x775   :  { %v649_v23 = vmul.f32 0.35355338, %v637_v21  ;;  %v651_v24 = vsel %vm289_vm5, %v648_v17, -inf }
 0x776   :  { %652 = vmax.xlane.f32.xlu0 %v651_v24 }
 0x777   :  { %v654_v25 = vsel %vm289_vm5, %v649_v23, -inf }
 0x778   :  { %655 = vmax.xlane.f32.xlu1 %v654_v25 }
 0x77a   :  { %658 = vmax.xlane.f32.xlu0 %v657_v26 }
 0x789   :  { %686 = vrot.lane.b32.xlu1 %v3462_v30, %s3317_s23 }
 0x803   :  { %v653_v27 = vpop.xlane.xlu0 %652 }
 0x804   :  { %v660_v29 = vsub.f32 %v648_v17, %v653_v27 }
 0x805   :  { %v656_v28 = vpop.xlane.xlu1 %655 }
 0x806   :  { %v661_v32 = vsub.f32 %v649_v23, %v656_v28  ;;  %v663_v37 = vmul.f32 1.442695, %v660_v29 }
 0x807   :  { %v659_v33 = vpop.xlane.xlu0 %658 }
 0x808   :  { %v665_v34 = vmul.f32 1.442695, %v661_v32  ;;  %v662_v35 = vsub.f32 %v650_v22, %v659_v33 }
 0x809   :  { %v687_v36 = vpop.permute.xlu1 %686 }
 0x80a   :  { %3193 = vpow2.f32 %v665_v34  ;;  %v667_v38 = vmul.f32 1.442695, %v662_v35  ;;  %2926 = vmatprep.subr.bf16.mxu1 %v687_v36 }
 0x80b   :  { %2927 = vmatpush3.bf16.msra.mxu1 %v687_v36 }
 0x80c   :  { %3195 = vpow2.f32 %v667_v38 }
 0x80d   :  { %3197 = vpow2.f32 %v663_v37 }
 0x814   :  { %v3194_v39 = vpop.eup %3193 }
 0x815   :  { %v672_v40 = vsel %vm289_vm5, %v3194_v39, 0.0 }
 0x816   :  { %v3196_v41 = vpop.eup %3195  ;;  %673 = vadd.xlane.f32.xlu1 %v672_v40 }
 0x817   :  { %v675_v42 = vsel %vm296_vm4, %v3196_v41, 0.0  ;;  %v3198_v43 = vpop.eup %3197 }
 0x818   :  { %676 = vadd.xlane.f32.xlu0 %v675_v42  ;;  %v669_v44 = vsel %vm289_vm5, %v3198_v43, 0.0 }
 0x81c   :  { %670 = vadd.xlane.f32.xlu0 %v669_v44 }
 0x827   :  { %769 = vrot.lane.b32.xlu1 %v3462_v30, %s3965_s24 }
 0x82b   :  { %771 = vrot.lane.b32.xlu1 %v3468_v31, %s3965_s24 }
 0x82f   :  { %767 = vrot.lane.b32.xlu1 %v3468_v31, %s3963_s25 }
 0x832   :  { %688 = vrot.lane.b32.xlu0 %v3468_v31, %s3317_s23 }
 0x836   :  { %765 = vrot.lane.b32.xlu0 %v3462_v30, %s3963_s25 }
 0x8a3   :  { %v674_v45 = vpop.xlane.xlu1 %673 }
 0x8a5   :  { %v677_v46 = vpop.xlane.xlu0 %676 }
 0x8a6   :  { %3199 = vrcp.f32 %v677_v46 }
 0x8a7   :  { %3201 = vrcp.f32 %v674_v45  ;;  %v770_v51 = vpop.permute.xlu1 %769 }
 0x8a8   :  { %v780_v59 = vsel %vm225_vm3, %v770_v51, 0 }
 0x8a9   :  { %v671_v47 = vpop.xlane.xlu0 %670 }
 0x8aa   :  { %3203 = vrcp.f32 %v671_v47 }
 0x8ab   :  { %v772_v61 = vpop.permute.xlu1 %771 }
 0x8ac   :  { %v783_v62 = vsel %vm225_vm3, %v772_v61, 0 }
 0x8ad   :  { %v689_v48 = vpop.permute.xlu0 %688 }
 0x8ae   :  { %v698_v49 = vand.u32 %v689_v48, %v3496_v2 }
 0x8af   :  { %v768_v63 = vpop.permute.xlu1 %767 }
 0x8b0   :  { %2928 = vmatprep.subr.bf16.mxu1 %v698_v49  ;;  %v3200_v50 = vpop.eup %3199 }
 0x8b1   :  { %2929 = vmatpush3.bf16.msra.mxu1 %v698_v49  ;;  %v3202_v52 = vpop.eup %3201  ;;  %v683_v54 = vmul.f32 %v3200_v50, %v3196_v41  ;;  %v766_v60 = vpop.permute.xlu0 %765 }
 0x8b2   :  { %3109 = vmatprep.subr.msk.bf16.mxu1 %vm225_vm3, %v770_v51  ;;  %v682_v56 = vmul.f32 %v3202_v52, %v3194_v39 }
 0x8b3   :  { %v685_v58 = vpack.c.bf16 %v683_v54, %v683_v54  ;;  %v3142_v54 = vld [vmem:[%s3940_s5 + $0x8] sm:$0xff]  }
 0x8b4   :  { %v3204_v53 = vpop.eup %3203 }
 0x8b5   :  { %v681_v55 = vmul.f32 %v3204_v53, %v3198_v43  ;;  %v3141_v53 = vld [vmem:[%s3940_s5] sm:$0xff]  }
 0x8b7   :  { %v684_v57 = vpack.c.bf16 %v682_v56, %v681_v55 }
 0x8b9   :  { %2930 = vmatprep.mubr.msk.bf16.mxu1 %vm289_vm5, %v684_v57 }
 0x8ba   :  { %2931 = vmatmul.mubr.msk.bf16.vlgmr.msra.gmra.mrb[8].mxu1 %vm289_vm5, %v685_v58 }
 0x8bb   :  { %2935 = vmatpush3.bf16.xpose.msra.mxu1 %v780_v59  ;;  %2938 = vmatprep.mubr.msk.bf16.mxu1 %vm225_vm3, %v766_v60 }
 0x8bc   :  { %3110 = vmatprep.subr.msk.bf16.mxu1 %vm225_vm3, %v772_v61 }
 0x8c3   :  { %2937 = vmatpush3.bf16.xpose.msra.mxu1 %v783_v62 }
 0x8ca   :  { %2939 = vmatmul.mubr.msk.bf16.vlgmr.msra.gmra.mrb[12].mxu1 %vm225_vm3, %v768_v63 }
 0x98d   :  { %v2932_v0 = vpop.f32.mrb[8].mxu1 }
 0x98e   :  { %v734_v1 = vpop.f32.mrb[9].mxu1 }
 0x98f   :  { %v2933_v3 = vpop.f32.mrb[10].mxu1 }
 0x990   :  { %v737_v4 = vpop.f32.mrb[11].mxu1 }
 0x99d   :  { %v2940_v5 = vpop.f32.mrb[12].mxu1 }
 0x99e   :  { %v819_v6 = vpop.f32.mrb[13].mxu1  ;;  %v835_v12 = vmul.f32 0.35355338, %v2940_v5 }
 0x99f   :  { %v833_v7 = vmul.f32 0.35355338, %v819_v6  ;;  %v2941_v8 = vpop.f32.mrb[14].mxu1 }
 0x9a0   :  { %v822_v9 = vpop.f32.mrb[15].mxu1  ;;  %v842_v20 = vsel %vm296_vm4, %v835_v12, -inf }
 0x9a1   :  { %v834_v14 = vmul.f32 0.35355338, %v822_v9  ;;  %v836_v15 = vsel %vm289_vm5, %v833_v7, -inf }
 0x9a2   :  { %837 = vmax.xlane.f32.xlu0 %v836_v15 }
 0x9a3   :  { %v839_v17 = vsel %vm289_vm5, %v834_v14, -inf }
 0x9a4   :  { %840 = vmax.xlane.f32.xlu1 %v839_v17 }
 0x9a6   :  { %843 = vmax.xlane.f32.xlu0 %v842_v20 }
 0xa2f   :  { %v838_v21 = vpop.xlane.xlu0 %837 }
 0xa30   :  { %v845_v23 = vsub.f32 %v833_v7, %v838_v21 }
 0xa31   :  { %v841_v22 = vpop.xlane.xlu1 %840 }
 0xa32   :  { %v846_v24 = vsub.f32 %v834_v14, %v841_v22  ;;  %v848_v28 = vmul.f32 1.442695, %v845_v23 }
 0xa33   :  { %v844_v25 = vpop.xlane.xlu0 %843 }
 0xa34   :  { %v850_v26 = vmul.f32 1.442695, %v846_v24  ;;  %v847_v27 = vsub.f32 %v835_v12, %v844_v25 }
 0xa36   :  { %3205 = vpow2.f32 %v850_v26  ;;  %v852_v29 = vmul.f32 1.442695, %v847_v27 }
 0xa38   :  { %3207 = vpow2.f32 %v852_v29 }
 0xa39   :  { %3209 = vpow2.f32 %v848_v28 }
 0xa40   :  { %v3206_v32 = vpop.eup %3205 }
 0xa41   :  { %v857_v33 = vsel %vm289_vm5, %v3206_v32, 0.0 }
 0xa42   :  { %v3208_v34 = vpop.eup %3207  ;;  %858 = vadd.xlane.f32.xlu1 %v857_v33 }
 0xa43   :  { %v860_v35 = vsel %vm296_vm4, %v3208_v34, 0.0  ;;  %v3210_v36 = vpop.eup %3209 }
 0xa44   :  { %861 = vadd.xlane.f32.xlu0 %v860_v35  ;;  %v854_v37 = vsel %vm289_vm5, %v3210_v36, 0.0 }
 0xa48   :  { %855 = vadd.xlane.f32.xlu0 %v854_v37 }
 0xa53   :  { %871 = vrot.lane.b32.xlu1 %v3462_v30, %s3961_s26 }
 0xa57   :  { %566 = vrot.lane.b32.xlu1 %v3539_v11, %s3957_s27 }
 0xa5b   :  { %568 = vrot.lane.b32.xlu1 %v3541_v13, %s3957_s27 }
 0xa5e   :  { %873 = vrot.lane.b32.xlu0 %v3468_v31, %s3961_s26 }
 0xa5f   :  { %751 = vrot.lane.b32.xlu1 %v734_v1, %s3955_s28 }
 0xa62   :  { %570 = vrot.lane.b32.xlu0 %v3537_v10, %s3957_s27  ;;  %s3959_s27 = smov 24  }
 0xa63   :  { %755 = vrot.lane.b32.xlu1 %v2932_v0, %s3955_s28 }
 0xa66   :  { %753 = vrot.lane.b32.xlu0 %v737_v4, %s3955_s28  ;;  %v2649_v4 = vld [vmem:[%s3941_s6] ss:$0 sm:$0xff] }
 0xacf   :  { %v859_v30 = vpop.xlane.xlu1 %858 }
 0xad1   :  { %v862_v38 = vpop.xlane.xlu0 %861 }
 0xad2   :  { %3211 = vrcp.f32 %v862_v38  ;;  %v3144_v38 = vld [vmem:[%s3944_s9 + $0x8] sm:$0xff]  }
 0xad3   :  { %v872_v11 = vpop.permute.xlu1 %871  ;;  %3213 = vrcp.f32 %v859_v30  ;;  %v3143_v30 = vld [vmem:[%s3944_s9] sm:$0xff]  }
 0xad4   :  { %2942 = vmatprep.subr.bf16.mxu0 %v872_v11  ;;  %2958 = vmatprep.subr.bf16.mxu1 %v3143_v30 }
 0xad5   :  { %v856_v13 = vpop.xlane.xlu0 %855  ;;  %2943 = vmatpush3.bf16.msra.mxu0 %v872_v11  ;;  %2959 = vmatpush3.bf16.msra.mxu1 %v3143_v30  ;;  %v3145_v11 = vld [vmem:[%s3946_s11] sm:$0xff]  }
 0xad6   :  { %3215 = vrcp.f32 %v856_v13  ;;  %2960 = vmatprep.subr.bf16.mxu1 %v3144_v38  ;;  %v3146_v13 = vld [vmem:[%s3946_s11 + $0x8] sm:$0xff]  }
 0xad7   :  { %v567_v31 = vpop.permute.xlu1 %566 }
 0xad8   :  { %576 = vst.msk [vmem:[#allocation2] sm:$0xff] %vm575_vm8, %v567_v31  ;;  %v3147_v31 = vld [vmem:[%s3946_s11 + $0x10] sm:$0xff]  }
 0xad9   :  { %v874_v39 = vpop.permute.xlu0 %873  ;;  %2961 = vmatpush3.bf16.msra.mxu1 %v3144_v38 }
 0xada   :  { %v883_v10 = vand.u32 %v874_v39, %v3496_v2  ;;  %v3148_v39 = vld [vmem:[%s3946_s11 + $0x18] sm:$0xff]  }
 0xadb   :  { %v569_v40 = vpop.permute.xlu1 %568 }
 0xadc   :  { %577 = vst.msk [vmem:[#allocation2 + $0x8] sm:$0xff] %vm575_vm8, %v569_v40  ;;  %2944 = vmatprep.subr.bf16.mxu0 %v883_v10  ;;  %v3212_v41 = vpop.eup %3211  ;;  %v3150_v40 = vld [vmem:[%s3946_s11 + $0x28] sm:$0xff]  }
 0xadd   :  { %v571_v42 = vpop.permute.xlu0 %570  ;;  %2945 = vmatpush3.bf16.msra.mxu0 %v883_v10  ;;  %v3214_v43 = vpop.eup %3213  ;;  %v868_v46 = vmul.f32 %v3212_v41, %v3208_v34  ;;  %v3149_v10 = vld [vmem:[%s3946_s11 + $0x20] sm:$0xff]  }
 0xade   :  { %579 = vst.msk [vmem:[#allocation2 + $0x10] sm:$0x1] %vm578_vm9, %v571_v42  ;;  %v867_v49 = vmul.f32 %v3214_v43, %v3206_v32  ;;  %2950 = vmatprep.subr.bf16.mxu0 %v3141_v53 }
 0xadf   :  { %v752_v44 = vpop.permute.xlu1 %751  ;;  %v870_v52 = vpack.c.bf16 %v868_v46, %v868_v46 }
 0xae0   :  { %v3216_v45 = vpop.eup %3215  ;;  %761 = vst.msk [vmem:[#allocation2] sm:$0xff] %vm760_vm10, %v752_v44 }
 0xae1   :  { %v754_v47 = vpop.permute.xlu0 %753  ;;  %v866_v48 = vmul.f32 %v3216_v45, %v3210_v36 }
 0xae2   :  { %762 = vst.msk [vmem:[#allocation2 + $0x8] sm:$0xff] %vm760_vm10, %v754_v47 }
 0xae3   :  { %v756_v50 = vpop.permute.xlu1 %755  ;;  %v869_v51 = vpack.c.bf16 %v867_v49, %v866_v48 }
 0xae4   :  { %764 = vst.msk [vmem:[#allocation2 + $0x10] sm:$0x1] %vm763_vm11, %v756_v50 }
 0xae5   :  { %2946 = vmatprep.mubr.msk.bf16.mxu0 %vm289_vm5, %v869_v51  ;;  %v2654_v51 = vld [vmem:[%s3942_s7] ss:$0 sm:$0xff] }
 0xae6   :  { %2947 = vmatmul.mubr.msk.bf16.vlgmr.msra.gmra.mrb[20].mxu0 %vm289_vm5, %v870_v52 }
 0xae7   :  { %2951 = vmatpush3.bf16.msra.mxu0 %v3141_v53 }
 0xae8   :  { %2952 = vmatprep.subr.bf16.mxu0 %v3142_v54 }
 0xaeb   :  { %2953 = vmatpush3.bf16.msra.mxu0 %v3142_v54 }
 0xaec   :  { %2966 = vmatprep.subr.bf16.mxu0 %v3145_v11 }
 0xbb9   :  { %v2948_v55 = vpop.f32.mrb[20].mxu0 }
 0xbba   :  { %v919_v56 = vpop.f32.mrb[21].mxu0 }
 0xbbb   :  { %936 = vrot.lane.b32.xlu0 %v919_v56, %s3959_s27  ;;  %v2949_v57 = vpop.f32.mrb[22].mxu0  ;;  %v2655_v56 = vld [vmem:[%s3943_s8] ss:$0 sm:$0xff] }
 0xbbc   :  { %v922_v58 = vpop.f32.mrb[23].mxu0 }
 0xbbd   :  { %938 = vrot.lane.b32.xlu1 %v922_v58, %s3959_s27 }
 0xbbf   :  { %940 = vrot.lane.b32.xlu0 %v2948_v55, %s3959_s27  ;;  %s3976_s27 = smov 24  }
 0xc2d   :  { %v937_v59 = vpop.permute.xlu0 %936 }
 0xc2e   :  { %946 = vst.msk [vmem:[#allocation2] sm:$0xff] %vm945_vm12, %v937_v59 }
 0xc2f   :  { %v939_v60 = vpop.permute.xlu1 %938 }
 0xc30   :  { %947 = vst.msk [vmem:[#allocation2 + $0x8] sm:$0xff] %vm945_vm12, %v939_v60 }
 0xc31   :  { %v941_v61 = vpop.permute.xlu0 %940 }
 0xc32   :  { %949 = vst.msk [vmem:[#allocation2 + $0x10] sm:$0x1] %vm948_vm13, %v941_v61 }
 0xc35   :  { %v950_v62 = vld [vmem:[#allocation2] sm:$0xff] }
 0xc37   :  { %v951_v63 = vld [vmem:[#allocation2 + $0x8] sm:$0xff] }
 0xc38   :  { %v953_v0 = vpack.c.bf16 %v951_v63, %v950_v62 }
 0xc39   :  { %v952_v1 = vld [vmem:[#allocation2 + $0x10] sm:$0x1] }
 0xc3a   :  { %2954 = vmatprep.mubr.msk.bf16.mxu0 %vm162_vm2, %v953_v0  ;;  %v954_v3 = vpack.c.bf16 %v952_v1, %v952_v1 }
 0xc3c   :  { %2955 = vmatmul.mubr.msk.bf16.vlgmr.msra.gmra.mrb[24].mxu0 %vm162_vm2, %v954_v3  ;;  %v3151_v3 = vld [vmem:[%s3946_s11 + $0x30] sm:$0xff]  }
 0xc3d   :  { %2967 = vmatpush3.bf16.msra.mxu0 %v3145_v11 }
 0xc3e   :  { %2968 = vmatprep.subr.bf16.mxu0 %v3146_v13 }
 0xc41   :  { %2969 = vmatpush3.bf16.msra.mxu0 %v3146_v13 }
 0xc42   :  { %2970 = vmatprep.subr.bf16.mxu0 %v3147_v31 }
 0xc45   :  { %2971 = vmatpush3.bf16.msra.mxu0 %v3147_v31 }
 0xc46   :  { %2972 = vmatprep.subr.bf16.mxu0 %v3148_v39 }
 0xc49   :  { %2973 = vmatpush3.bf16.msra.mxu0 %v3148_v39 }
 0xc4a   :  { %2974 = vmatprep.subr.bf16.mxu0 %v3149_v10 }
 0xc4d   :  { %2975 = vmatpush3.bf16.msra.mxu0 %v3149_v10 }
 0xc4e   :  { %2976 = vmatprep.subr.bf16.mxu0 %v3150_v40 }
 0xc51   :  { %2977 = vmatpush3.bf16.msra.mxu0 %v3150_v40 }
 0xc52   :  { %2978 = vmatprep.subr.bf16.mxu0 %v3151_v3 }
 0xc55   :  { %2979 = vmatpush3.bf16.msra.mxu0 %v3151_v3 }
 0xd0f   :  { %v2956_v5 = vpop.f32.mrb[24].mxu0 }
 0xd10   :  { %v1018_v6 = vpop.f32.mrb[25].mxu0  ;;  %v1027_v12 = vadd.f32 %v2956_v5, %v2649_v4  ;;  %v2656_v5 = vld [vmem:[%s3945_s10] ss:$0 sm:$0xff] }
 0xd11   :  { %v1019_v7 = vadd.f32 %v2649_v4, %v1018_v6  ;;  %v2957_v8 = vpop.f32.mrb[26].mxu0 }
 0xd12   :  { %v1021_v9 = vpop.f32.mrb[27].mxu0  ;;  %v1034_v22 = vadd.f32 %v1027_v12, %v3447_v16 }
 0xd13   :  { %v1022_v14 = vadd.f32 %v2649_v4, %v1021_v9  ;;  %v1032_v15 = vadd.f32 %v1019_v7, %v3449_v18  ;;  %v3152_v4 = vld [vmem:[%s3946_s11 + $0x38] sm:$0xff]  }
 0xd14   :  { %v1044_v23 = vsel %vm1043_vm14, %v1034_v22, 0.0  ;;  %2980 = vmatprep.subr.bf16.mxu0 %v3152_v4 }
 0xd15   :  { %v1037_v17 = vsel %vm162_vm2, %v1032_v15, 0.0  ;;  %v1033_v20 = vadd.f32 %v1022_v14, %v3451_v19  ;;  %2981 = vmatpush3.bf16.msra.mxu0 %v3152_v4 }
 0xd16   :  { %1038 = vadd.xlane.f32.xlu1 %v1037_v17 }
 0xd17   :  { %v1040_v21 = vsel %vm162_vm2, %v1033_v20, 0.0 }
 0xd18   :  { %1041 = vadd.xlane.f32.xlu0 %v1040_v21 }
 0xd1c   :  { %1045 = vadd.xlane.f32.xlu0 %v1044_v23 }
 0xda3   :  { %v1039_v24 = vpop.xlane.xlu1 %1038 }
 0xda4   :  { %v1048_v25 = vmul.f32 0.03125, %v1039_v24  ;;  %v2661_v24 = vld [vmem:[%s3947_s12] ss:$0 sm:$0xff] }
 0xda5   :  { %v1042_v26 = vpop.xlane.xlu0 %1041 }
 0xda6   :  { %v1051_v27 = vsub.f32 %v1032_v15, %v1048_v25  ;;  %v1049_v28 = vmul.f32 0.03125, %v1042_v26 }
 0xda8   :  { %v1052_v18 = vsub.f32 %v1033_v20, %v1049_v28  ;;  %v1054_v29 = vmul.f32 %v1051_v27, %v1051_v27 }
 0xda9   :  { %v1046_v32 = vpop.xlane.xlu0 %1045 }
 0xdaa   :  { %v1050_v33 = vmul.f32 0.03125, %v1046_v32  ;;  %v1057_v19 = vsel %vm162_vm2, %v1054_v29, 0.0  ;;  %v1055_v34 = vmul.f32 %v1052_v18, %v1052_v18 }
 0xdab   :  { %1058 = vadd.xlane.f32.xlu1 %v1057_v19 }
 0xdac   :  { %v1053_v35 = vsub.f32 %v1034_v22, %v1050_v33  ;;  %v1060_v16 = vsel %vm162_vm2, %v1055_v34, 0.0 }
 0xdad   :  { %1061 = vadd.xlane.f32.xlu0 %v1060_v16 }
 0xdae   :  { %v1056_v36 = vmul.f32 %v1053_v35, %v1053_v35 }
 0xdb0   :  { %v1063_v37 = vsel %vm1043_vm14, %v1056_v36, 0.0 }
 0xdb1   :  { %1064 = vadd.xlane.f32.xlu1 %v1063_v37 }
 0xe38   :  { %v1059_v41 = vpop.xlane.xlu1 %1058 }
 0xe39   :  { %v1066_v42 = vmul.f32 0.03125, %v1059_v41 }
 0xe3a   :  { %v1062_v43 = vpop.xlane.xlu0 %1061 }
 0xe3b   :  { %v1069_v44 = vadd.f32 1e-05, %v1066_v42  ;;  %v1067_v45 = vmul.f32 0.03125, %v1062_v43 }
 0xe3d   :  { %3217 = vrsqrt.f32 %v1069_v44  ;;  %v1070_v46 = vadd.f32 1e-05, %v1067_v45 }
 0xe3e   :  { %v1065_v47 = vpop.xlane.xlu1 %1064 }
 0xe3f   :  { %3219 = vrsqrt.f32 %v1070_v46  ;;  %v1068_v48 = vmul.f32 0.03125, %v1065_v47  ;;  %v3153_v47 = vld [vmem:[%s3938_s3 + $0x10] sm:$0xff]  }
 0xe40   :  { %2986 = vmatprep.subr.bf16.mxu1 %v3153_v47 }
 0xe41   :  { %v1071_v49 = vadd.f32 1e-05, %v1068_v48  ;;  %v3154_v48 = vld [vmem:[%s3938_s3 + $0x18] sm:$0xff]  }
 0xe43   :  { %3221 = vrsqrt.f32 %v1071_v49 }
 0xe47   :  { %v3218_v50 = vpop.eup %3217 }
 0xe48   :  { %v1075_v52 = vmul.f32 %v3218_v50, %v1051_v27 }
 0xe49   :  { %v3220_v53 = vpop.eup %3219 }
 0xe4a   :  { %v1076_v54 = vmul.f32 %v3220_v53, %v1052_v18  ;;  %v1084_v55 = vmul.f32 %v2654_v51, %v1075_v52 }
 0xe4c   :  { %v1085_v57 = vmul.f32 %v2654_v51, %v1076_v54  ;;  %v1093_v60 = vadd.f32 %v2655_v56, %v1084_v55 }
 0xe4d   :  { %v3222_v58 = vpop.eup %3221 }
 0xe4e   :  { %v1077_v59 = vmul.f32 %v3222_v58, %v1053_v35  ;;  %v1094_v61 = vadd.f32 %v2655_v56, %v1085_v57 }
 0xe50   :  { %v1096_v62 = vpack.c.bf16 %v1094_v61, %v1093_v60  ;;  %v1086_v63 = vmul.f32 %v2654_v51, %v1077_v59  ;;  %v2670_v59 = vld [vmem:[%s3948_s13] ss:$0 sm:$0xff] }
 0xe52   :  { %2962 = vmatprep.mubr.msk.bf16.mxu1 %vm162_vm2, %v1096_v62  ;;  %v1095_v0 = vadd.f32 %v2655_v56, %v1086_v63 }
 0xe54   :  { %v1097_v1 = vpack.c.bf16 %v1095_v0, %v1095_v0 }
 0xe56   :  { %2963 = vmatmul.mubr.msk.bf16.vlgmr.msra.gmra.mrb[16].mxu1 %vm162_vm2, %v1097_v1  ;;  %v2671_v1 = vld [vmem:[%s3949_s14] ss:$0 sm:$0xff] }
 0xe57   :  { %2987 = vmatpush3.bf16.msra.mxu1 %v3153_v47 }
 0xe58   :  { %2988 = vmatprep.subr.bf16.mxu1 %v3154_v48 }
 0xe5b   :  { %2989 = vmatpush3.bf16.msra.mxu1 %v3154_v48 }
 0xf29   :  { %v2964_v6 = vpop.f32.mrb[16].mxu1 }
 0xf2a   :  { %v1170_v7 = vadd.f32 %v2964_v6, %v2656_v5  ;;  %v1161_v8 = vpop.f32.mrb[17].mxu1 }
 0xf2b   :  { %v1162_v9 = vadd.f32 %v2656_v5, %v1161_v8  ;;  %v2965_v12 = vpop.f32.mrb[18].mxu1 }
 0xf2c   :  { %v1164_v14 = vpop.f32.mrb[19].mxu1  ;;  %v1177_v17 = vmax.f32 %v1170_v7, 0.0 }
 0xf2d   :  { %v1165_v15 = vadd.f32 %v2656_v5, %v1164_v14  ;;  %v1175_v20 = vmax.f32 %v1162_v9, 0.0  ;;  %v2677_v14 = vld [vmem:[%s3939_s4 + $0x1] ss:$0 sm:$0xff]  ;;  %s3971_s4 = smov 72  }
 0xf2e   :  { %v1179_v23 = vpack.c.bf16 %v1177_v17, %v1177_v17 }
 0xf2f   :  { %v1176_v21 = vmax.f32 %v1165_v15, 0.0 }
 0xf31   :  { %v1178_v22 = vpack.c.bf16 %v1176_v21, %v1175_v20 }
 0xf33   :  { %2982 = vmatprep.mubr.bf16.mxu0 %v1178_v22 }
 0xf34   :  { %2983 = vmatmul.mubr.bf16.vlgmr.msra.gmra.mrb[28].mxu0 %v1179_v23 }
0x1007   :  { %v2984_v25 = vpop.f32.mrb[28].mxu0 }
0x1008   :  { %v1285_v26 = vpop.f32.mrb[29].mxu0  ;;  %v1294_v27 = vadd.f32 %v2984_v25, %v2661_v24 }
0x1009   :  { %v1286_v28 = vadd.f32 %v2661_v24, %v1285_v26  ;;  %v2985_v18 = vpop.f32.mrb[30].mxu0 }
0x100a   :  { %v1288_v29 = vpop.f32.mrb[31].mxu0  ;;  %v1301_v35 = vadd.f32 %v1294_v27, %v1095_v0 }
0x100b   :  { %v1289_v32 = vadd.f32 %v2661_v24, %v1288_v29  ;;  %v1299_v33 = vadd.f32 %v1286_v28, %v1093_v60 }
0x100c   :  { %v1310_v36 = vsel %vm1043_vm14, %v1301_v35, 0.0 }
0x100d   :  { %v1304_v19 = vsel %vm162_vm2, %v1299_v33, 0.0  ;;  %v1300_v34 = vadd.f32 %v1289_v32, %v1094_v61 }
0x100e   :  { %1305 = vadd.xlane.f32.xlu0 %v1304_v19 }
0x100f   :  { %v1307_v16 = vsel %vm162_vm2, %v1300_v34, 0.0 }
0x1010   :  { %1308 = vadd.xlane.f32.xlu1 %v1307_v16 }
0x1012   :  { %1311 = vadd.xlane.f32.xlu0 %v1310_v36 }
0x109b   :  { %v1306_v37 = vpop.xlane.xlu0 %1305 }
0x109c   :  { %v1313_v30 = vmul.f32 0.03125, %v1306_v37 }
0x109d   :  { %v1309_v38 = vpop.xlane.xlu1 %1308 }
0x109e   :  { %v1316_v11 = vsub.f32 %v1299_v33, %v1313_v30  ;;  %v1314_v13 = vmul.f32 0.03125, %v1309_v38 }
0x109f   :  { %v1312_v31 = vpop.xlane.xlu0 %1311 }
0x10a0   :  { %v1317_v39 = vsub.f32 %v1300_v34, %v1314_v13  ;;  %v1315_v10 = vmul.f32 0.03125, %v1312_v31  ;;  %v1319_v40 = vmul.f32 %v1316_v11, %v1316_v11 }
0x10a2   :  { %v1318_v41 = vsub.f32 %v1301_v35, %v1315_v10  ;;  %v1322_v42 = vsel %vm162_vm2, %v1319_v40, 0.0  ;;  %v1320_v43 = vmul.f32 %v1317_v39, %v1317_v39 }
0x10a3   :  { %1323 = vadd.xlane.f32.xlu1 %v1322_v42 }
0x10a4   :  { %v1325_v44 = vsel %vm162_vm2, %v1320_v43, 0.0  ;;  %v1321_v45 = vmul.f32 %v1318_v41, %v1318_v41 }
0x10a5   :  { %1326 = vadd.xlane.f32.xlu0 %v1325_v44 }
0x10a6   :  { %v1328_v46 = vsel %vm1043_vm14, %v1321_v45, 0.0 }
0x10a7   :  { %1329 = vadd.xlane.f32.xlu1 %v1328_v46 }
0x1130   :  { %v1324_v49 = vpop.xlane.xlu1 %1323 }
0x1131   :  { %v1331_v50 = vmul.f32 0.03125, %v1324_v49 }
0x1132   :  { %v1327_v51 = vpop.xlane.xlu0 %1326 }
0x1133   :  { %v1334_v52 = vadd.f32 1e-05, %v1331_v50  ;;  %v1332_v53 = vmul.f32 0.03125, %v1327_v51 }
0x1134   :  { %v1330_v54 = vpop.xlane.xlu1 %1329 }
0x1135   :  { %3223 = vrsqrt.f32 %v1334_v52  ;;  %v1335_v55 = vadd.f32 1e-05, %v1332_v53  ;;  %v1333_v56 = vmul.f32 0.03125, %v1330_v54 }
0x1137   :  { %3225 = vrsqrt.f32 %v1335_v55  ;;  %v1336_v57 = vadd.f32 1e-05, %v1333_v56 }
0x1139   :  { %3227 = vrsqrt.f32 %v1336_v57 }
0x113f   :  { %v3224_v58 = vpop.eup %3223 }
0x1140   :  { %v1340_v60 = vmul.f32 %v3224_v58, %v1316_v11 }
0x1141   :  { %v3226_v61 = vpop.eup %3225 }
0x1142   :  { %v1341_v62 = vmul.f32 %v3226_v61, %v1317_v39  ;;  %v1349_v63 = vmul.f32 %v2670_v59, %v1340_v60 }
0x1143   :  { %v3228_v0 = vpop.eup %3227 }
0x1144   :  { %v1342_v3 = vmul.f32 %v3228_v0, %v1318_v41  ;;  %v1350_v4 = vmul.f32 %v2670_v59, %v1341_v62  ;;  %v3686_v5 = vadd.f32 %v2671_v1, %v1349_v63 }
0x1146   :  { %v3688_v6 = vadd.f32 %v2671_v1, %v1350_v4  ;;  %v1351_v7 = vmul.f32 %v2670_v59, %v1342_v3 }
0x1148   :  { %v1361_v8 = vpack.c.bf16 %v3688_v6, %v3686_v5  ;;  %v3692_v9 = vadd.f32 %v2671_v1, %v1351_v7 }
0x114a   :  { %2990 = vmatprep.mubr.msk.bf16.mxu1 %vm162_vm2, %v1361_v8  ;;  %v1362_v12 = vpack.c.bf16 %v3692_v9, %v3692_v9 }
0x114c   :  { %2991 = vmatmul.mubr.msk.bf16.vlgmr.msra.gmra.mrb[20].mxu1 %vm162_vm2, %v1362_v12 }
0x121f   :  { %v2992_v15 = vpop.f32.mrb[20].mxu1 }
0x1220   :  { %v1437_v17 = vadd.f32 %v2992_v15, %v2677_v14  ;;  %v1428_v20 = vpop.f32.mrb[21].mxu1 }
0x1221   :  { %v2993_v21 = vpop.f32.mrb[22].mxu1  ;;  %v1429_v24 = vadd.f32 %v2677_v14, %v1428_v20 }
0x1222   :  { %v3701_v22 = vpack.c.bf16 %v1437_v17, %v1437_v17  ;;  %v1431_v23 = vpop.f32.mrb[23].mxu1 }
0x1223   :  { %v1432_v25 = vadd.f32 %v2677_v14, %v1431_v23 }
0x1224   :  { %1448 = vrot.lane.b32.xlu1 %v3701_v22, %s3309_s18 }
0x1225   :  { %v3705_v26 = vpack.c.bf16 %v1432_v25, %v1429_v24 }
0x1227   :  { %1446 = vrot.lane.b32.xlu0 %v3705_v26, %s3309_s18  ;;  %2998 = vmatprep.mubr.msk.bf16.mxu1 %vm225_vm3, %v3705_v26  ;;  %s3972_s18 = smov 104  }
0x1228   :  { %1617 = vrot.lane.b32.xlu1 %v3705_v26, %s3310_s19 }
0x122b   :  { %1619 = vrot.lane.b32.xlu0 %v3701_v22, %s3310_s19  ;;  %s3973_s19 = smov 40  }
0x122c   :  { %1613 = vrot.lane.b32.xlu1 %v3705_v26, %s3312_s2 }
0x122f   :  { %1615 = vrot.lane.b32.xlu0 %v3701_v22, %s3312_s2  ;;  %s3975_s2 = smov 16  }
0x1296   :  { %v1449_v27 = vpop.permute.xlu1 %1448 }
0x1297   :  { %v1460_v34 = vsel %vm225_vm3, %v1449_v27, 0 }
0x1299   :  { %v1447_v28 = vpop.permute.xlu0 %1446 }
0x129a   :  { %v1457_v18 = vsel %vm225_vm3, %v1447_v28, 0  ;;  %v1618_v29 = vpop.permute.xlu1 %1617  ;;  %3111 = vmatprep.subr.msk.bf16.mxu1 %vm225_vm3, %v1447_v28 }
0x129b   :  { %v1628_v32 = vsel %vm225_vm3, %v1618_v29, 0  ;;  %2995 = vmatpush3.bf16.xpose.msra.mxu1 %v1457_v18  ;;  %3113 = vmatprep.subr.msk.bf16.mxu0 %vm225_vm3, %v1618_v29 }
0x129c   :  { %3112 = vmatprep.subr.msk.bf16.mxu1 %vm225_vm3, %v1449_v27  ;;  %3011 = vmatpush3.bf16.xpose.msra.mxu0 %v1628_v32 }
0x129d   :  { %v1620_v33 = vpop.permute.xlu0 %1619 }
0x129e   :  { %v1614_v19 = vpop.permute.xlu1 %1613  ;;  %3114 = vmatprep.subr.msk.bf16.mxu0 %vm225_vm3, %v1620_v33  ;;  %v1631_v35 = vsel %vm225_vm3, %v1620_v33, 0 }
0x129f   :  { %3014 = vmatprep.mubr.msk.bf16.mxu0 %vm225_vm3, %v1614_v19 }
0x12a1   :  { %v1616_v16 = vpop.permute.xlu0 %1615 }
0x12a3   :  { %2997 = vmatpush3.bf16.xpose.msra.mxu1 %v1460_v34 }
0x12a4   :  { %3013 = vmatpush3.bf16.xpose.msra.mxu0 %v1631_v35 }
0x12aa   :  { %2999 = vmatmul.mubr.msk.bf16.vlgmr.msra.gmra.mrb[24].mxu1 %vm225_vm3, %v3701_v22 }
0x12ab   :  { %3015 = vmatmul.mubr.msk.bf16.vlgmr.msra.gmra.mrb[32].mxu0 %vm225_vm3, %v1616_v16 }
0x137d   :  { %v3000_v36 = vpop.f32.mrb[24].mxu1 }
0x137e   :  { %v1496_v37 = vpop.f32.mrb[25].mxu1  ;;  %v3016_v30 = vpop.f32.mrb[32].mxu0  ;;  %v1512_v43 = vmul.f32 0.35355338, %v3000_v36 }
0x137f   :  { %v1510_v38 = vmul.f32 0.35355338, %v1496_v37  ;;  %v3001_v11 = vpop.f32.mrb[26].mxu1  ;;  %v1667_v13 = vpop.f32.mrb[33].mxu0  ;;  %v1683_v45 = vmul.f32 0.35355338, %v3016_v30 }
0x1380   :  { %v1499_v31 = vpop.f32.mrb[27].mxu1  ;;  %v3017_v39 = vpop.f32.mrb[34].mxu0  ;;  %v1681_v10 = vmul.f32 0.35355338, %v1667_v13  ;;  %v1519_v48 = vsel %vm296_vm4, %v1512_v43, -inf }
0x1381   :  { %v1511_v40 = vmul.f32 0.35355338, %v1499_v31  ;;  %v1670_v41 = vpop.f32.mrb[35].mxu0  ;;  %v1513_v42 = vsel %vm289_vm5, %v1510_v38, -inf  ;;  %v1690_v49 = vsel %vm296_vm4, %v1683_v45, -inf }
0x1382   :  { %1514 = vmax.xlane.f32.xlu1 %v1513_v42  ;;  %v1684_v46 = vsel %vm289_vm5, %v1681_v10, -inf  ;;  %v1682_v47 = vmul.f32 0.35355338, %v1670_v41 }
0x1383   :  { %v1516_v44 = vsel %vm289_vm5, %v1511_v40, -inf }
0x1384   :  { %1517 = vmax.xlane.f32.xlu0 %v1516_v44  ;;  %v1687_v50 = vsel %vm289_vm5, %v1682_v47, -inf }
0x1386   :  { %1685 = vmax.xlane.f32.xlu1 %v1684_v46 }
0x1388   :  { %1520 = vmax.xlane.f32.xlu0 %v1519_v48 }
0x138a   :  { %1691 = vmax.xlane.f32.xlu1 %v1690_v49 }
0x138c   :  { %1688 = vmax.xlane.f32.xlu0 %v1687_v50 }
0x139b   :  { %1550 = vrot.lane.b32.xlu1 %v3701_v22, %s3311_s1 }
0x13a2   :  { %1548 = vrot.lane.b32.xlu0 %v3705_v26, %s3311_s1  ;;  %s3974_s1 = smov 8  }
0x140f   :  { %v1515_v51 = vpop.xlane.xlu1 %1514 }
0x1410   :  { %v1522_v53 = vsub.f32 %v1510_v38, %v1515_v51 }
0x1411   :  { %v1518_v52 = vpop.xlane.xlu0 %1517 }
0x1412   :  { %v1525_v58 = vmul.f32 1.442695, %v1522_v53  ;;  %v1523_v62 = vsub.f32 %v1511_v40, %v1518_v52 }
0x1413   :  { %v1686_v54 = vpop.xlane.xlu1 %1685 }
0x1414   :  { %v1693_v56 = vsub.f32 %v1681_v10, %v1686_v54  ;;  %v1527_v12 = vmul.f32 1.442695, %v1523_v62 }
0x1415   :  { %v1521_v55 = vpop.xlane.xlu0 %1520 }
0x1416   :  { %v1524_v57 = vsub.f32 %v1512_v43, %v1521_v55  ;;  %v1696_v0 = vmul.f32 1.442695, %v1693_v56 }
0x1417   :  { %v1692_v59 = vpop.xlane.xlu1 %1691 }
0x1418   :  { %v1529_v60 = vmul.f32 1.442695, %v1524_v57  ;;  %v1695_v61 = vsub.f32 %v1683_v45, %v1692_v59 }
0x1419   :  { %v1689_v63 = vpop.xlane.xlu0 %1688 }
0x141a   :  { %3229 = vpow2.f32 %v1529_v60  ;;  %v1700_v1 = vmul.f32 1.442695, %v1695_v61  ;;  %v1694_v3 = vsub.f32 %v1682_v47, %v1689_v63 }
0x141b   :  { %3231 = vpow2.f32 %v1525_v58  ;;  %v1551_v4 = vpop.permute.xlu1 %1550 }
0x141c   :  { %3233 = vpow2.f32 %v1700_v1  ;;  %v1698_v7 = vmul.f32 1.442695, %v1694_v3  ;;  %v1560_v14 = vand.u32 %v1551_v4, %v3496_v2 }
0x141d   :  { %v1549_v8 = vpop.permute.xlu0 %1548  ;;  %3235 = vpow2.f32 %v1696_v0 }
0x141e   :  { %3002 = vmatprep.subr.bf16.mxu1 %v1549_v8  ;;  %3237 = vpow2.f32 %v1698_v7 }
0x141f   :  { %3003 = vmatpush3.bf16.msra.mxu1 %v1549_v8  ;;  %3239 = vpow2.f32 %v1527_v12 }
0x1420   :  { %3004 = vmatprep.subr.bf16.mxu1 %v1560_v14 }
0x1423   :  { %3005 = vmatpush3.bf16.msra.mxu1 %v1560_v14 }
0x1424   :  { %v3230_v15 = vpop.eup %3229 }
0x1425   :  { %v3232_v17 = vpop.eup %3231  ;;  %v1537_v20 = vsel %vm296_vm4, %v3230_v15, 0.0 }
0x1426   :  { %v3234_v21 = vpop.eup %3233  ;;  %1538 = vadd.xlane.f32.xlu0 %v1537_v20  ;;  %v1531_v25 = vsel %vm289_vm5, %v3232_v17, 0.0 }
0x1427   :  { %v1708_v23 = vsel %vm296_vm4, %v3234_v21, 0.0  ;;  %v3236_v24 = vpop.eup %3235 }
0x1428   :  { %1709 = vadd.xlane.f32.xlu1 %v1708_v23  ;;  %v3238_v27 = vpop.eup %3237  ;;  %v1702_v28 = vsel %vm289_vm5, %v3236_v24, 0.0 }
0x1429   :  { %v3240_v18 = vpop.eup %3239  ;;  %v1705_v29 = vsel %vm289_vm5, %v3238_v27, 0.0 }
0x142a   :  { %1532 = vadd.xlane.f32.xlu0 %v1531_v25  ;;  %v1534_v32 = vsel %vm289_vm5, %v3240_v18, 0.0 }
0x142c   :  { %1703 = vadd.xlane.f32.xlu1 %v1702_v28 }
0x142e   :  { %1706 = vadd.xlane.f32.xlu0 %v1705_v29 }
0x1430   :  { %1535 = vadd.xlane.f32.xlu1 %v1534_v32 }
0x1441   :  { %1719 = vrot.lane.b32.xlu1 %v3705_v26, %s3314_s20 }
0x1444   :  { %1721 = vrot.lane.b32.xlu0 %v3701_v22, %s3314_s20 }
0x1445   :  { %1800 = vrot.lane.b32.xlu1 %v3705_v26, %s3315_s21 }
0x1448   :  { %1802 = vrot.lane.b32.xlu0 %v3701_v22, %s3315_s21 }
0x1449   :  { %1796 = vrot.lane.b32.xlu1 %v3705_v26, %s3316_s22 }
0x144c   :  { %1798 = vrot.lane.b32.xlu0 %v3701_v22, %s3316_s22 }
0x14b3   :  { %v1539_v33 = vpop.xlane.xlu0 %1538 }
0x14b4   :  { %3241 = vrcp.f32 %v1539_v33 }
0x14b5   :  { %v1710_v19 = vpop.xlane.xlu1 %1709 }
0x14b7   :  { %v1533_v34 = vpop.xlane.xlu0 %1532 }
0x14b8   :  { %3243 = vrcp.f32 %v1533_v34 }
0x14b9   :  { %v1704_v35 = vpop.xlane.xlu1 %1703 }
0x14bb   :  { %v1707_v16 = vpop.xlane.xlu0 %1706 }
0x14bc   :  { %3245 = vrcp.f32 %v1707_v16 }
0x14bd   :  { %3247 = vrcp.f32 %v1704_v35  ;;  %v1536_v36 = vpop.xlane.xlu1 %1535 }
0x14be   :  { %3249 = vrcp.f32 %v1536_v36  ;;  %v3242_v30 = vpop.eup %3241 }
0x14bf   :  { %3251 = vrcp.f32 %v1710_v19  ;;  %v1545_v39 = vmul.f32 %v3242_v30, %v3230_v15  ;;  %v1722_v42 = vpop.permute.xlu0 %1721 }
0x14c0   :  { %v1731_v48 = vand.u32 %v1722_v42, %v3496_v2 }
0x14c1   :  { %v1720_v37 = vpop.permute.xlu1 %1719  ;;  %v1547_v45 = vpack.c.bf16 %v1545_v39, %v1545_v39 }
0x14c2   :  { %3018 = vmatprep.subr.bf16.mxu1 %v1720_v37  ;;  %v3244_v38 = vpop.eup %3243 }
0x14c3   :  { %v1543_v10 = vmul.f32 %v3244_v38, %v3232_v17  ;;  %v1803_v54 = vpop.permute.xlu0 %1802 }
0x14c4   :  { %v1814_v55 = vsel %vm225_vm3, %v1803_v54, 0 }
0x14c5   :  { %v1801_v50 = vpop.permute.xlu1 %1800 }
0x14c6   :  { %v3246_v11 = vpop.eup %3245  ;;  %v1811_v53 = vsel %vm225_vm3, %v1801_v50, 0 }
0x14c7   :  { %v3248_v13 = vpop.eup %3247  ;;  %v1715_v41 = vmul.f32 %v3246_v11, %v3238_v27  ;;  %v1799_v56 = vpop.permute.xlu0 %1798 }
0x14c8   :  { %v3250_v31 = vpop.eup %3249  ;;  %v1714_v44 = vmul.f32 %v3248_v13, %v3236_v24 }
0x14c9   :  { %v1544_v40 = vmul.f32 %v3250_v31, %v3240_v18  ;;  %v3252_v46 = vpop.eup %3251  ;;  %v1797_v52 = vpop.permute.xlu1 %1796 }
0x14ca   :  { %v1717_v47 = vpack.c.bf16 %v1715_v41, %v1714_v44  ;;  %v1716_v49 = vmul.f32 %v3252_v46, %v3234_v21 }
0x14cb   :  { %v1546_v43 = vpack.c.bf16 %v1544_v40, %v1543_v10 }
0x14cc   :  { %v1718_v51 = vpack.c.bf16 %v1716_v49, %v1716_v49 }
0x14cd   :  { %3006 = vmatprep.mubr.msk.bf16.mxu1 %vm289_vm5, %v1546_v43 }
0x14ce   :  { %3007 = vmatmul.mubr.msk.bf16.vlgmr.msra.gmra.mrb[28].mxu1 %vm289_vm5, %v1547_v45 }
0x14cf   :  { %3019 = vmatpush3.bf16.msra.mxu1 %v1720_v37  ;;  %3022 = vmatprep.mubr.msk.bf16.mxu1 %vm289_vm5, %v1717_v47 }
0x14d0   :  { %3020 = vmatprep.subr.bf16.mxu1 %v1731_v48 }
0x14d3   :  { %3021 = vmatpush3.bf16.msra.mxu1 %v1731_v48 }
0x14d4   :  { %3115 = vmatprep.subr.msk.bf16.mxu1 %vm225_vm3, %v1801_v50 }
0x14d6   :  { %3023 = vmatmul.mubr.msk.bf16.vlgmr.msra.gmra.mrb[32].mxu1 %vm289_vm5, %v1718_v51 }
0x14d7   :  { %3030 = vmatprep.mubr.msk.bf16.mxu1 %vm225_vm3, %v1797_v52 }
0x14dc   :  { %3027 = vmatpush3.bf16.xpose.msra.mxu1 %v1811_v53 }
0x14dd   :  { %3116 = vmatprep.subr.msk.bf16.mxu1 %vm225_vm3, %v1803_v54 }
0x14e4   :  { %3029 = vmatpush3.bf16.xpose.msra.mxu1 %v1814_v55 }
0x14eb   :  { %3031 = vmatmul.mubr.msk.bf16.vlgmr.msra.gmra.mrb[36].mxu1 %vm225_vm3, %v1799_v56 }
0x15a1   :  { %v3008_v57 = vpop.f32.mrb[28].mxu1 }
0x15a2   :  { %1612 = vst.msk [vmem:[#allocation2 + $0x10] sm:$0x1] %vm393_vm7, %v3008_v57  ;;  %v1596_v58 = vpop.f32.mrb[29].mxu1 }
0x15a3   :  { %1610 = vst.msk [vmem:[#allocation2] sm:$0xff] %vm225_vm3, %v1596_v58  ;;  %v3009_v59 = vpop.f32.mrb[30].mxu1 }
0x15a4   :  { %v1599_v60 = vpop.f32.mrb[31].mxu1 }
0x15a5   :  { %1611 = vst.msk [vmem:[#allocation2 + $0x8] sm:$0xff] %vm225_vm3, %v1599_v60 }
0x15a9   :  { %v3774_v61 = vpop.f32.mrb[32].mxu1 }
0x15aa   :  { %v3776_v62 = vpop.f32.mrb[33].mxu1 }
0x15ab   :  { %v3025_v63 = vpop.f32.mrb[34].mxu1 }
0x15ac   :  { %v3778_v0 = vpop.f32.mrb[35].mxu1 }
0x15be   :  { %v3032_v1 = vpop.f32.mrb[36].mxu1 }
0x15bf   :  { %v1850_v3 = vpop.f32.mrb[37].mxu1  ;;  %v1866_v15 = vmul.f32 0.35355338, %v3032_v1 }
0x15c0   :  { %v1864_v4 = vmul.f32 0.35355338, %v1850_v3  ;;  %v3033_v7 = vpop.f32.mrb[38].mxu1 }
0x15c1   :  { %v1853_v8 = vpop.f32.mrb[39].mxu1  ;;  %v1873_v20 = vsel %vm296_vm4, %v1866_v15, -inf }
0x15c2   :  { %v1865_v12 = vmul.f32 0.35355338, %v1853_v8  ;;  %v1867_v14 = vsel %vm289_vm5, %v1864_v4, -inf }
0x15c3   :  { %1868 = vmax.xlane.f32.xlu1 %v1867_v14 }
0x15c4   :  { %v1870_v17 = vsel %vm289_vm5, %v1865_v12, -inf }
0x15c5   :  { %1871 = vmax.xlane.f32.xlu0 %v1870_v17 }
0x15c9   :  { %1874 = vmax.xlane.f32.xlu0 %v1873_v20 }
0x1650   :  { %v1869_v21 = vpop.xlane.xlu1 %1868 }
0x1651   :  { %v1876_v25 = vsub.f32 %v1864_v4, %v1869_v21 }
0x1652   :  { %v1872_v23 = vpop.xlane.xlu0 %1871 }
0x1653   :  { %v1877_v24 = vsub.f32 %v1865_v12, %v1872_v23  ;;  %v1879_v29 = vmul.f32 1.442695, %v1876_v25 }
0x1655   :  { %v1881_v27 = vmul.f32 1.442695, %v1877_v24 }
0x1656   :  { %v1875_v28 = vpop.xlane.xlu0 %1874 }
0x1657   :  { %3253 = vpow2.f32 %v1881_v27  ;;  %v1878_v18 = vsub.f32 %v1866_v15, %v1875_v28 }
0x1659   :  { %v1883_v32 = vmul.f32 1.442695, %v1878_v18 }
0x165b   :  { %3255 = vpow2.f32 %v1883_v32 }
0x165c   :  { %3257 = vpow2.f32 %v1879_v29 }
0x1661   :  { %v3254_v33 = vpop.eup %3253 }
0x1662   :  { %v1888_v19 = vsel %vm289_vm5, %v3254_v33, 0.0 }
0x1663   :  { %1889 = vadd.xlane.f32.xlu0 %v1888_v19 }
0x1665   :  { %v3256_v34 = vpop.eup %3255 }
0x1666   :  { %v1891_v35 = vsel %vm296_vm4, %v3256_v34, 0.0  ;;  %v3258_v16 = vpop.eup %3257 }
0x1667   :  { %1892 = vadd.xlane.f32.xlu1 %v1891_v35  ;;  %v1885_v36 = vsel %vm289_vm5, %v3258_v16, 0.0 }
0x166b   :  { %1886 = vadd.xlane.f32.xlu1 %v1885_v36 }
0x1679   :  { %1902 = vrot.lane.b32.xlu0 %v3705_v26, %s3317_s23 }
0x167c   :  { %1904 = vrot.lane.b32.xlu1 %v3701_v22, %s3317_s23 }
0x167d   :  { %1985 = vrot.lane.b32.xlu0 %v3701_v22, %s3971_s4 }
0x1680   :  { %1983 = vrot.lane.b32.xlu1 %v3705_v26, %s3971_s4 }
0x1681   :  { %1981 = vrot.lane.b32.xlu0 %v3701_v22, %s3972_s18 }
0x1684   :  { %1979 = vrot.lane.b32.xlu1 %v3705_v26, %s3972_s18 }
0x16f0   :  { %v1890_v37 = vpop.xlane.xlu0 %1889 }
0x16f4   :  { %v1893_v30 = vpop.xlane.xlu1 %1892  ;;  %v1903_v38 = vpop.permute.xlu0 %1902 }
0x16f5   :  { %3034 = vmatprep.subr.bf16.mxu0 %v1903_v38  ;;  %3259 = vrcp.f32 %v1893_v30 }
0x16f6   :  { %3035 = vmatpush3.bf16.msra.mxu0 %v1903_v38  ;;  %3261 = vrcp.f32 %v1890_v37 }
0x16f8   :  { %v1887_v11 = vpop.xlane.xlu1 %1886  ;;  %v1986_v49 = vpop.permute.xlu0 %1985 }
0x16f9   :  { %3263 = vrcp.f32 %v1887_v11  ;;  %v1997_v50 = vsel %vm225_vm3, %v1986_v49, 0 }
0x16fc   :  { %v1905_v13 = vpop.permute.xlu1 %1904  ;;  %v1982_v51 = vpop.permute.xlu0 %1981 }
0x16fd   :  { %v1914_v31 = vand.u32 %v1905_v13, %v3496_v2 }
0x16ff   :  { %3036 = vmatprep.subr.bf16.mxu0 %v1914_v31  ;;  %v3260_v39 = vpop.eup %3259 }
0x1700   :  { %v1984_v10 = vpop.permute.xlu1 %1983  ;;  %3037 = vmatpush3.bf16.msra.mxu0 %v1914_v31  ;;  %v3262_v40 = vpop.eup %3261  ;;  %v1899_v42 = vmul.f32 %v3260_v39, %v3256_v34 }
0x1701   :  { %3117 = vmatprep.subr.msk.bf16.mxu0 %vm225_vm3, %v1984_v10  ;;  %v1898_v44 = vmul.f32 %v3262_v40, %v3254_v33  ;;  %v1994_v47 = vsel %vm225_vm3, %v1984_v10, 0  ;;  %v3155_v40 = vld [vmem:[%s3940_s5 + $0x10] sm:$0xff]  }
0x1702   :  { %v1901_v46 = vpack.c.bf16 %v1899_v42, %v1899_v42 }
0x1703   :  { %v3264_v41 = vpop.eup %3263 }
0x1704   :  { %v1897_v43 = vmul.f32 %v3264_v41, %v3258_v16  ;;  %v1980_v48 = vpop.permute.xlu1 %1979  ;;  %v3156_v41 = vld [vmem:[%s3940_s5 + $0x18] sm:$0xff]  }
0x1706   :  { %v1900_v45 = vpack.c.bf16 %v1898_v44, %v1897_v43 }
0x1708   :  { %3038 = vmatprep.mubr.msk.bf16.mxu0 %vm289_vm5, %v1900_v45 }
0x1709   :  { %3039 = vmatmul.mubr.msk.bf16.vlgmr.msra.gmra.mrb[36].mxu0 %vm289_vm5, %v1901_v46 }
0x170a   :  { %3043 = vmatpush3.bf16.xpose.msra.mxu0 %v1994_v47  ;;  %3046 = vmatprep.mubr.msk.bf16.mxu0 %vm225_vm3, %v1980_v48 }
0x170b   :  { %3118 = vmatprep.subr.msk.bf16.mxu0 %vm225_vm3, %v1986_v49 }
0x1712   :  { %3045 = vmatpush3.bf16.xpose.msra.mxu0 %v1997_v50 }
0x1719   :  { %3047 = vmatmul.mubr.msk.bf16.vlgmr.msra.gmra.mrb[40].mxu0 %vm225_vm3, %v1982_v51 }
0x17dc   :  { %v3040_v52 = vpop.f32.mrb[36].mxu0 }
0x17dd   :  { %v1950_v53 = vpop.f32.mrb[37].mxu0 }
0x17de   :  { %v3041_v54 = vpop.f32.mrb[38].mxu0 }
0x17df   :  { %v1953_v55 = vpop.f32.mrb[39].mxu0  ;;  %v2703_v54 = vld [vmem:[%s3941_s6 + $0x1] ss:$0 sm:$0xff] }
0x17ec   :  { %v3048_v56 = vpop.f32.mrb[40].mxu0 }
0x17ed   :  { %v2033_v57 = vpop.f32.mrb[41].mxu0  ;;  %v2049_v3 = vmul.f32 0.35355338, %v3048_v56 }
0x17ee   :  { %v2047_v58 = vmul.f32 0.35355338, %v2033_v57  ;;  %v3049_v59 = vpop.f32.mrb[42].mxu0 }
0x17ef   :  { %v2036_v60 = vpop.f32.mrb[43].mxu0  ;;  %v2056_v7 = vsel %vm296_vm4, %v2049_v3, -inf }
0x17f0   :  { %v2048_v63 = vmul.f32 0.35355338, %v2036_v60  ;;  %v2050_v1 = vsel %vm289_vm5, %v2047_v58, -inf }
0x17f1   :  { %2051 = vmax.xlane.f32.xlu1 %v2050_v1 }
0x17f2   :  { %v2053_v4 = vsel %vm289_vm5, %v2048_v63, -inf }
0x17f3   :  { %2054 = vmax.xlane.f32.xlu0 %v2053_v4 }
0x17f7   :  { %2057 = vmax.xlane.f32.xlu0 %v2056_v7 }
0x187e   :  { %v2052_v8 = vpop.xlane.xlu1 %2051 }
0x187f   :  { %v2059_v15 = vsub.f32 %v2047_v58, %v2052_v8 }
0x1880   :  { %v2055_v12 = vpop.xlane.xlu0 %2054 }
0x1881   :  { %v2060_v14 = vsub.f32 %v2048_v63, %v2055_v12  ;;  %v2062_v23 = vmul.f32 1.442695, %v2059_v15 }
0x1883   :  { %v2064_v17 = vmul.f32 1.442695, %v2060_v14 }
0x1884   :  { %v2058_v20 = vpop.xlane.xlu0 %2057 }
0x1885   :  { %3265 = vpow2.f32 %v2064_v17  ;;  %v2061_v21 = vsub.f32 %v2049_v3, %v2058_v20 }
0x1887   :  { %v2066_v24 = vmul.f32 1.442695, %v2061_v21 }
0x1889   :  { %3267 = vpow2.f32 %v2066_v24 }
0x188a   :  { %3269 = vpow2.f32 %v2062_v23 }
0x188f   :  { %v3266_v25 = vpop.eup %3265 }
0x1890   :  { %v2071_v27 = vsel %vm289_vm5, %v3266_v25, 0.0 }
0x1891   :  { %2072 = vadd.xlane.f32.xlu0 %v2071_v27 }
0x1893   :  { %v3268_v28 = vpop.eup %3267 }
0x1894   :  { %v2074_v18 = vsel %vm296_vm4, %v3268_v28, 0.0  ;;  %v3270_v29 = vpop.eup %3269 }
0x1895   :  { %2075 = vadd.xlane.f32.xlu1 %v2074_v18  ;;  %v2068_v32 = vsel %vm289_vm5, %v3270_v29, 0.0 }
0x1899   :  { %2069 = vadd.xlane.f32.xlu1 %v2068_v32  ;;  %v3157_v32 = vld [vmem:[%s3944_s9 + $0x10] sm:$0xff]  }
0x189a   :  { %3066 = vmatprep.subr.bf16.mxu0 %v3157_v32 }
0x189b   :  { %3067 = vmatpush3.bf16.msra.mxu0 %v3157_v32 }
0x18a7   :  { %2085 = vrot.lane.b32.xlu0 %v3705_v26, %s3973_s19 }
0x18aa   :  { %2087 = vrot.lane.b32.xlu1 %v3701_v22, %s3973_s19  ;;  %s3326_s19 = smov [#allocation3]  }
0x18ab   :  { %1786 = vrot.lane.b32.xlu0 %v3778_v0, %s3974_s1 }
0x18ae   :  { %1784 = vrot.lane.b32.xlu1 %v3776_v62, %s3974_s1 }
0x18af   :  { %1967 = vrot.lane.b32.xlu0 %v1950_v53, %s3975_s2 }
0x18b2   :  { %1788 = vrot.lane.b32.xlu1 %v3774_v61, %s3974_s1  ;;  %s2616_s1 = sshll.u32 %s3326_s19, 4  ;;  %s2617_s1 = int_to_ptr.vmem [resolvable:$true] %s2616_s1 }
0x18b3   :  { %1971 = vrot.lane.b32.xlu0 %v3040_v52, %s3975_s2  ;;  %p3290_p1 = scmp.lt.s32.totalorder %s2617_s1, %s2617_s1 }
0x18b6   :  { %1969 = vrot.lane.b32.xlu1 %v1953_v55, %s3975_s2 }
0x191e   :  { %v2073_v33 = vpop.xlane.xlu0 %2072 }
0x1922   :  { %v2076_v26 = vpop.xlane.xlu1 %2075  ;;  %v2086_v19 = vpop.permute.xlu0 %2085 }
0x1923   :  { %3050 = vmatprep.subr.bf16.mxu1 %v2086_v19  ;;  %3271 = vrcp.f32 %v2076_v26  ;;  %v3159_v26 = vld [vmem:[%s3946_s11 + $0x40] sm:$0xff]  }
0x1924   :  { %3051 = vmatpush3.bf16.msra.mxu1 %v2086_v19  ;;  %3273 = vrcp.f32 %v2073_v33  ;;  %v3158_v33 = vld [vmem:[%s3944_s9 + $0x18] sm:$0xff]   ;;  %v3160_v19 = vld [vmem:[%s3946_s11 + $0x48] sm:$0xff]  }
0x1925   :  { %3068 = vmatprep.subr.bf16.mxu0 %v3158_v33 }
0x1926   :  { %v2070_v22 = vpop.xlane.xlu1 %2069  ;;  %v1787_v0 = vpop.permute.xlu0 %1786  ;;  %3069 = vmatpush3.bf16.msra.mxu0 %v3158_v33 }
0x1927   :  { %3275 = vrcp.f32 %v2070_v22  ;;  %1794 = vst.msk [vmem:[#allocation2 + $0x8] sm:$0xff] %vm575_vm8, %v1787_v0  ;;  %v3161_v22 = vld [vmem:[%s3946_s11 + $0x50] sm:$0xff]   ;;  %v3162_v0 = vld [vmem:[%s3946_s11 + $0x58] sm:$0xff]  }
0x192a   :  { %v2088_v62 = vpop.permute.xlu1 %2087  ;;  %v1968_v61 = vpop.permute.xlu0 %1967 }
0x192b   :  { %v2097_v34 = vand.u32 %v2088_v62, %v3496_v2  ;;  %v3163_v62 = vld [vmem:[%s3946_s11 + $0x60] sm:$0xff]  }
0x192d   :  { %3052 = vmatprep.subr.bf16.mxu1 %v2097_v34  ;;  %v3272_v35 = vpop.eup %3271 }
0x192e   :  { %v1785_v16 = vpop.permute.xlu1 %1784  ;;  %3053 = vmatpush3.bf16.msra.mxu1 %v2097_v34  ;;  %v3274_v36 = vpop.eup %3273  ;;  %v2082_v30 = vmul.f32 %v3272_v35, %v3268_v28  ;;  %v3164_v34 = vld [vmem:[%s3946_s11 + $0x68] sm:$0xff]  }
0x192f   :  { %1793 = vst.msk [vmem:[#allocation2] sm:$0xff] %vm575_vm8, %v1785_v16  ;;  %v2081_v13 = vmul.f32 %v3274_v36, %v3266_v25  ;;  %v1972_v31 = vpop.permute.xlu0 %1971  ;;  %3058 = vmatprep.subr.bf16.mxu1 %v3155_v40 }
0x1930   :  { %1976 = vst.msk [vmem:[#allocation2] sm:$0xff] %vm760_vm10, %v1968_v61  ;;  %v2084_v39 = vpack.c.bf16 %v2082_v30, %v2082_v30 }
0x1931   :  { %v3276_v37 = vpop.eup %3275 }
0x1932   :  { %v1789_v38 = vpop.permute.xlu1 %1788  ;;  %v2080_v11 = vmul.f32 %v3276_v37, %v3270_v29 }
0x1933   :  { %1795 = vst.msk [vmem:[#allocation2 + $0x10] sm:$0x1] %vm578_vm9, %v1789_v38 }
0x1934   :  { %1978 = vst.msk [vmem:[#allocation2 + $0x10] sm:$0x1] %vm763_vm11, %v1972_v31  ;;  %v2083_v2 = vpack.c.bf16 %v2081_v13, %v2080_v11 }
0x1936   :  { %v1970_v10 = vpop.permute.xlu1 %1969  ;;  %3054 = vmatprep.mubr.msk.bf16.mxu1 %vm289_vm5, %v2083_v2  ;;  %v2710_v2 = vld [vmem:[%s3942_s7 + $0x1] ss:$0 sm:$0xff] }
0x1937   :  { %1977 = vst.msk [vmem:[#allocation2 + $0x8] sm:$0xff] %vm760_vm10, %v1970_v10  ;;  %3055 = vmatmul.mubr.msk.bf16.vlgmr.msra.gmra.mrb[40].mxu1 %vm289_vm5, %v2084_v39 }
0x1938   :  { %3059 = vmatpush3.bf16.msra.mxu1 %v3155_v40 }
0x1939   :  { %3060 = vmatprep.subr.bf16.mxu1 %v3156_v41 }
0x193c   :  { %3061 = vmatpush3.bf16.msra.mxu1 %v3156_v41 }
0x193d   :  { %3074 = vmatprep.subr.bf16.mxu1 %v3159_v26 }
0x1a0a   :  { %v3056_v42 = vpop.f32.mrb[40].mxu1 }
0x1a0b   :  { %v2133_v43 = vpop.f32.mrb[41].mxu1 }
0x1a0c   :  { %2150 = vrot.lane.b32.xlu1 %v2133_v43, %s3976_s27  ;;  %v3057_v44 = vpop.f32.mrb[42].mxu1  ;;  %v2711_v43 = vld [vmem:[%s3943_s8 + $0x1] ss:$0 sm:$0xff] }
0x1a0d   :  { %v2136_v45 = vpop.f32.mrb[43].mxu1 }
0x1a0e   :  { %2152 = vrot.lane.b32.xlu0 %v2136_v45, %s3976_s27 }
0x1a10   :  { %2154 = vrot.lane.b32.xlu1 %v3056_v42, %s3976_s27 }
0x1a7e   :  { %v2151_v46 = vpop.permute.xlu1 %2150 }
0x1a7f   :  { %2159 = vst.msk [vmem:[#allocation2] sm:$0xff] %vm945_vm12, %v2151_v46 }
0x1a80   :  { %v2153_v47 = vpop.permute.xlu0 %2152 }
0x1a81   :  { %2160 = vst.msk [vmem:[#allocation2 + $0x8] sm:$0xff] %vm945_vm12, %v2153_v47 }
0x1a82   :  { %v2155_v48 = vpop.permute.xlu1 %2154 }
0x1a83   :  { %2161 = vst.msk [vmem:[#allocation2 + $0x10] sm:$0x1] %vm948_vm13, %v2155_v48 }
0x1a86   :  { %v2162_v49 = vld [vmem:[#allocation2] sm:$0xff] }
0x1a88   :  { %v2163_v50 = vld [vmem:[#allocation2 + $0x8] sm:$0xff] }
0x1a89   :  { %v2165_v51 = vpack.c.bf16 %v2163_v50, %v2162_v49 }
0x1a8a   :  { %v2164_v52 = vld [vmem:[#allocation2 + $0x10] sm:$0x1] }
0x1a8b   :  { %3062 = vmatprep.mubr.msk.bf16.mxu1 %vm162_vm2, %v2165_v51  ;;  %v2166_v53 = vpack.c.bf16 %v2164_v52, %v2164_v52  ;;  %v3165_v52 = vld [vmem:[%s3946_s11 + $0x70] sm:$0xff]  }
0x1a8d   :  { %3063 = vmatmul.mubr.msk.bf16.vlgmr.msra.gmra.mrb[44].mxu1 %vm162_vm2, %v2166_v53  ;;  %v3166_v53 = vld [vmem:[%s3946_s11 + $0x78] sm:$0xff]  }
0x1a8e   :  { %3075 = vmatpush3.bf16.msra.mxu1 %v3159_v26 }
0x1a8f   :  { %3076 = vmatprep.subr.bf16.mxu1 %v3160_v19 }
0x1a92   :  { %3077 = vmatpush3.bf16.msra.mxu1 %v3160_v19 }
0x1a93   :  { %3078 = vmatprep.subr.bf16.mxu1 %v3161_v22 }
0x1a96   :  { %3079 = vmatpush3.bf16.msra.mxu1 %v3161_v22  ;;  %v2750_v22 = vld [vmem:[%s3948_s13 + $0x1] ss:$0 sm:$0xff]  ;;  %s3285_s13 = scalar_lea.vmem %s2617_s1, 16 }
0x1a97   :  { %3080 = vmatprep.subr.bf16.mxu1 %v3162_v0  ;;  %p3286_p0 = scmp.ne.s32.totalorder %s2617_s1, %s3285_s13 }
0x1a9a   :  { %3081 = vmatpush3.bf16.msra.mxu1 %v3162_v0 }
0x1a9b   :  { %3082 = vmatprep.subr.bf16.mxu1 %v3163_v62 }
0x1a9e   :  { %3083 = vmatpush3.bf16.msra.mxu1 %v3163_v62  ;;  %v2751_v62 = vld [vmem:[%s3949_s14 + $0x1] ss:$0 sm:$0xff]  ;;  %s3289_s14 = scalar_lea.vmem %s2617_s1, 32 }
0x1a9f   :  { %3084 = vmatprep.subr.bf16.mxu1 %v3164_v34  ;;  %p3291_p2 = scmp.lt.s32.totalorder %s3289_s14, %s3285_s13 }
0x1aa1   :  { %p3292_p3 = por %p3291_p2, %p3290_p1 }
0x1aa2   :  { %3085 = vmatpush3.bf16.msra.mxu1 %v3164_v34 }
0x1aa3   :  { %3086 = vmatprep.subr.bf16.mxu1 %v3165_v52  ;;  %p3293_p4 = pnand %p3292_p3, %p3286_p0 }
0x1aa6   :  { %3087 = vmatpush3.bf16.msra.mxu1 %v3165_v52 }
0x1aa7   :  { %3088 = vmatprep.subr.bf16.mxu1 %v3166_v53 }
0x1aaa   :  { %3089 = vmatpush3.bf16.msra.mxu1 %v3166_v53 }
0x1b60   :  { %v3064_v55 = vpop.f32.mrb[44].mxu1 }
0x1b61   :  { %v2232_v56 = vpop.f32.mrb[45].mxu1  ;;  %v2241_v57 = vadd.f32 %v3064_v55, %v2703_v54 }
0x1b62   :  { %v2233_v58 = vadd.f32 %v2703_v54, %v2232_v56  ;;  %v3065_v59 = vpop.f32.mrb[46].mxu1 }
0x1b63   :  { %v2235_v60 = vpop.f32.mrb[47].mxu1  ;;  %v2248_v3 = vadd.f32 %v2241_v57, %v3692_v9 }
0x1b64   :  { %v2246_v63 = vadd.f32 %v2233_v58, %v3686_v5  ;;  %v2236_v1 = vadd.f32 %v2703_v54, %v2235_v60  ;;  %v2717_v54 = vld [vmem:[%s3945_s10 + $0x1] ss:$0 sm:$0xff] }
0x1b65   :  { %v2259_v12 = vsel %vm1043_vm14, %v2248_v3, 0.0 }
0x1b66   :  { %v2247_v4 = vadd.f32 %v2236_v1, %v3688_v6  ;;  %v2253_v7 = vsel %vm162_vm2, %v2246_v63, 0.0 }
0x1b67   :  { %2254 = vadd.xlane.f32.xlu0 %v2253_v7 }
0x1b68   :  { %v2256_v8 = vsel %vm162_vm2, %v2247_v4, 0.0 }
0x1b69   :  { %2257 = vadd.xlane.f32.xlu1 %v2256_v8 }
0x1b6b   :  { %2260 = vadd.xlane.f32.xlu0 %v2259_v12  ;;  %v2739_v12 = vld [vmem:[%s3947_s12 + $0x1] ss:$0 sm:$0xff] }
0x1bf4   :  { %v2255_v14 = vpop.xlane.xlu0 %2254 }
0x1bf5   :  { %v2262_v15 = vmul.f32 0.03125, %v2255_v14 }
0x1bf6   :  { %v2258_v17 = vpop.xlane.xlu1 %2257 }
0x1bf7   :  { %v2265_v20 = vsub.f32 %v2246_v63, %v2262_v15  ;;  %v2263_v21 = vmul.f32 0.03125, %v2258_v17 }
0x1bf8   :  { %v2261_v5 = vpop.xlane.xlu0 %2260 }
0x1bf9   :  { %v2266_v23 = vsub.f32 %v2247_v4, %v2263_v21  ;;  %v2264_v24 = vmul.f32 0.03125, %v2261_v5  ;;  %v2268_v9 = vmul.f32 %v2265_v20, %v2265_v20 }
0x1bfb   :  { %v2267_v25 = vsub.f32 %v2248_v3, %v2264_v24  ;;  %v2271_v6 = vsel %vm162_vm2, %v2268_v9, 0.0  ;;  %v2269_v27 = vmul.f32 %v2266_v23, %v2266_v23 }
0x1bfc   :  { %2272 = vadd.xlane.f32.xlu0 %v2271_v6 }
0x1bfd   :  { %v2274_v28 = vsel %vm162_vm2, %v2269_v27, 0.0  ;;  %v2270_v18 = vmul.f32 %v2267_v25, %v2267_v25 }
0x1bfe   :  { %2275 = vadd.xlane.f32.xlu1 %v2274_v28  ;;  %v3167_v28 = vld [vmem:[%s3950_s15] sm:$0xff]  }
0x1bff   :  { %v2277_v29 = vsel %vm1043_vm14, %v2270_v18, 0.0  ;;  %v3324_v18 = vmov 0.0  }
0x1c00   :  { %2278 = vadd.xlane.f32.xlu0 %v2277_v29  ;;  %3094 = vmatprep.subr.bf16.mxu0 %v3324_v18  ;;  %v3168_v29 = vld [vmem:[%s3950_s15 + $0x8] sm:$0xff]  }
0x1c89   :  { %v2273_v61 = vpop.xlane.xlu0 %2272 }
0x1c8a   :  { %v2280_v35 = vmul.f32 0.03125, %v2273_v61 }
0x1c8b   :  { %v2276_v16 = vpop.xlane.xlu1 %2275 }
0x1c8c   :  { %v2283_v36 = vadd.f32 1e-05, %v2280_v35  ;;  %v2281_v37 = vmul.f32 0.03125, %v2276_v16  ;;  %v2552_v16 = vld [vmem:[%s3951_s16] sm:$0x1] }
0x1c8d   :  { %v2279_v30 = vpop.xlane.xlu0 %2278 }
0x1c8e   :  { %3277 = vrsqrt.f32 %v2283_v36  ;;  %v2284_v38 = vadd.f32 1e-05, %v2281_v37  ;;  %v2282_v11 = vmul.f32 0.03125, %v2279_v30 }
0x1c90   :  { %3279 = vrsqrt.f32 %v2284_v38  ;;  %v2285_v13 = vadd.f32 1e-05, %v2282_v11 }
0x1c92   :  { %3281 = vrsqrt.f32 %v2285_v13 }
0x1c98   :  { %v3278_v31 = vpop.eup %3277 }
0x1c99   :  { %v2289_v39 = vmul.f32 %v3278_v31, %v2265_v20 }
0x1c9a   :  { %v3280_v10 = vpop.eup %3279 }
0x1c9b   :  { %v2290_v40 = vmul.f32 %v3280_v10, %v2266_v23  ;;  %v2298_v41 = vmul.f32 %v2710_v2, %v2289_v39 }
0x1c9c   :  { %v3282_v42 = vpop.eup %3281 }
0x1c9d   :  { %v2291_v44 = vmul.f32 %v3282_v42, %v2267_v25  ;;  %v2299_v45 = vmul.f32 %v2710_v2, %v2290_v40  ;;  %v2307_v46 = vadd.f32 %v2711_v43, %v2298_v41 }
0x1c9f   :  { %v2308_v47 = vadd.f32 %v2711_v43, %v2299_v45  ;;  %v2300_v48 = vmul.f32 %v2710_v2, %v2291_v44 }
0x1ca1   :  { %v2310_v49 = vpack.c.bf16 %v2308_v47, %v2307_v46  ;;  %v2309_v50 = vadd.f32 %v2711_v43, %v2300_v48 }
0x1ca3   :  { %3070 = vmatprep.mubr.msk.bf16.mxu0 %vm162_vm2, %v2310_v49  ;;  %v2311_v51 = vpack.c.bf16 %v2309_v50, %v2309_v50 }
0x1ca5   :  { %3071 = vmatmul.mubr.msk.bf16.vlgmr.msra.gmra.mrb[44].mxu0 %vm162_vm2, %v2311_v51 }
0x1ca6   :  { %3095 = vmatpush3.bf16.msra.mxu0 %v3167_v28  ;;  %3098 = vmatprep.mubr.msk.bf16.mxu0 %vm3325_vm15, %v3324_v18 }
0x1ca7   :  { %3096 = vmatprep.subr.bf16.mxu0 %v3324_v18 }
0x1caa   :  { %3097 = vmatpush3.bf16.msra.mxu0 %v3168_v29 }
0x1d78   :  { %v3072_v55 = vpop.f32.mrb[44].mxu0 }
0x1d79   :  { %v2386_v56 = vadd.f32 %v3072_v55, %v2717_v54  ;;  %v2377_v57 = vpop.f32.mrb[45].mxu0 }
0x1d7a   :  { %v2378_v58 = vadd.f32 %v2717_v54, %v2377_v57  ;;  %v3073_v59 = vpop.f32.mrb[46].mxu0 }
0x1d7b   :  { %v2380_v60 = vpop.f32.mrb[47].mxu0  ;;  %v2393_v1 = vmax.f32 %v2386_v56, 0.0 }
0x1d7c   :  { %v2381_v63 = vadd.f32 %v2717_v54, %v2380_v60  ;;  %v2391_v3 = vmax.f32 %v2378_v58, 0.0 }
0x1d7d   :  { %v2395_v8 = vpack.c.bf16 %v2393_v1, %v2393_v1 }
0x1d7e   :  { %v2392_v4 = vmax.f32 %v2381_v63, 0.0 }
0x1d80   :  { %v2394_v7 = vpack.c.bf16 %v2392_v4, %v2391_v3 }
0x1d82   :  { %3090 = vmatprep.mubr.bf16.mxu1 %v2394_v7 }
0x1d83   :  { %3091 = vmatmul.mubr.bf16.vlgmr.msra.gmra.mrb[48].mxu1 %v2395_v8 }
0x1e56   :  { %v3092_v14 = vpop.f32.mrb[48].mxu1 }
0x1e57   :  { %v2503_v15 = vpop.f32.mrb[49].mxu1 }
0x1e58   :  { %v2504_v17 = vadd.f32 %v2739_v12, %v2503_v15  ;;  %v3093_v20 = vpop.f32.mrb[50].mxu1 }
0x1e59   :  { %v2506_v21 = vpop.f32.mrb[51].mxu1 }
0x1e5a   :  { %v2515_v5 = vadd.f32 %v2504_v17, %v2307_v46 }
0x1e5c   :  { %v2520_v23 = vsel %vm162_vm2, %v2515_v5, 0.0 }
0x1e5d   :  { %2521 = vadd.xlane.f32.xlu1 %v2520_v23 }
0x1eea   :  { %v2522_v24 = vpop.xlane.xlu1 %2521 }
0x1eeb   :  { %v2523_v9 = vmul.f32 0.03125, %v2522_v24 }
0x1eed   :  { %v2524_v25 = vsub.f32 %v2515_v5, %v2523_v9 }
0x1eef   :  { %v2525_v6 = vmul.f32 %v2524_v25, %v2524_v25 }
0x1ef1   :  { %v2526_v27 = vsel %vm162_vm2, %v2525_v6, 0.0 }
0x1ef2   :  { %2527 = vadd.xlane.f32.xlu0 %v2526_v27 }
0x1f7f   :  { %v2528_v32 = vpop.xlane.xlu0 %2527 }
0x1f80   :  { %v2529_v33 = vmul.f32 0.03125, %v2528_v32 }
0x1f82   :  { %v2530_v26 = vadd.f32 1e-05, %v2529_v33 }
0x1f84   :  { %3283 = vrsqrt.f32 %v2530_v26 }
0x1f8e   :  { %v3284_v19 = vpop.eup %3283 }
0x1f8f   :  { %v2532_v0 = vmul.f32 %v3284_v19, %v2524_v25 }
0x1f91   :  { %v2539_v34 = vmul.f32 %v2750_v22, %v2532_v0 }
0x1f93   :  { %v2546_v61 = vadd.f32 %v2751_v62, %v2539_v34 }
0x1f95   :  { %v2547_v35 = vpack.c.bf16 %v2546_v61, %v2546_v61 }
0x1f97   :  { %3099 = vmatmul.mubr.msk.bf16.vlgmr.msra.gmra.mrb[48].mxu0 %vm162_vm2, %v2547_v35 }
0x206a   :  { %v2602_v36 = vpop.f32.mrb[48].mxu0 }
0x206b   :  { %v2603_v37 = vadd.f32 %v2602_v36, %v2552_v16  ;;  %v3100_v30 = vpop.f32.mrb[49].mxu0 }
0x206c   :  { %v2605_v38 = vpop.f32.mrb[50].mxu0 }
0x206d   :  { %v3101_v11 = vpop.f32.mrb[51].mxu0  ;;  %2609 = vst.msk [vmem:[#allocation3] sm:$0x1] %vm2608_vm0, %v2603_v37 }
0x206e   :  { %3296 = shalt.err (!%p3293_p4)
}
0x206f   :  { %s3297_s20 = scalar_lea.hbm %s3952_s17, 16 }
0x2070   :  { %p3298_p5 = scmp.ne.s32.totalorder %s3952_s17, %s3297_s20  ;;  %p3301_p6 = scmp.lt.u32.totalorder %s3297_s20, %s3952_s17 }
0x2072   :  { %p3303_p7 = pnand %p3301_p6, %p3298_p5 }
0x2074   :  { %3306 = shalt.err (!%p3303_p7)
}
0x2075   :  { %2619 = dma.vmem_to_hbm [thread:$0]  %s2617_s1, 16, %s3952_s17, [#allocation4]  }
0x2076   :  { %3307 = dma.done.wait [#allocation4], 16  }
0x2077   :  { %3308 = vsyncadd [#allocation4], 4294967280 }
0x2078   :  { %2623 = vsyncpa [#allocation4], 1 }

</bundles_post_ra>
